<compile_context>
chip_gen: v7x
topology: tpu7x:2x2x1
jax: 0.10.0
libtpu: 0.0.40
codegen_flags: <defaults>
</compile_context>

<pallas_src>
import numpy as np
import jax
import jax.numpy as jnp
from jax.experimental import pallas as pl
from jax.experimental.pallas import tpu as pltpu

IN_SIZE = 100      # required by fc in_features=100 after the conv/pool chain
OUT_SIZE = 32
F_PAD = 128        # padded input-feature width (lane-aligned contraction dim)
OUT_PAD = 128      # padded output width (lane-dense stores)
BATCH_TILE = 256   # MXU-shaped M dimension; clamped / split for small batches


def _round_up(n, m):
    return ((n + m - 1) // m) * m


# ---------------------------------------------------------------------------
# Parameter setup (glue, plain JAX / numpy)
# ---------------------------------------------------------------------------
def make_params(key, out_size=OUT_SIZE):
    """Deterministic synthetic parameters with PyTorch-default-like fan-in scaling."""
    ks = jax.random.split(key, 8)

    def u(k, shape, fan_in):
        bound = 1.0 / np.sqrt(fan_in)
        return jax.random.uniform(k, shape, jnp.float32, -bound, bound)

    return dict(
        w1=u(ks[0], (16, 1, 3), 1 * 3),  b1=u(ks[1], (16,), 1 * 3),
        w2=u(ks[2], (8, 16, 3), 16 * 3), b2=u(ks[3], (8,), 16 * 3),
        w3=u(ks[4], (4, 8, 3), 8 * 3),   b3=u(ks[5], (4,), 8 * 3),
        wfc=u(ks[6], (out_size, 100), 100), bfc=u(ks[7], (out_size,), 100),
    )


def quantize_weights(p):
    """bf16 round-trip for the matmul weights (what the kernel stores), so the
    pure-JAX reference uses bit-identical weight values."""
    return {k: (v.astype(jnp.bfloat16).astype(jnp.float32)
                if k in ("w1", "w2", "w3", "wfc") else v)
            for k, v in p.items()}


def conv1d_as_matrix(w, L):
    """(C*L, O*L) matrix A s.t. flat(x) @ A == flat(conv1d(x, w, padding=1)),
    with both sides flattened as index c*L + l (PyTorch NCL row-major)."""
    O, C, K = w.shape
    A = np.zeros((C * L, O * L), dtype=np.float32)
    for o in range(O):
        for c in range(C):
            for k in range(K):
                d = k - 1
                for m in range(L):
                    l = m + d
                    if 0 <= l < L:
                        A[c * L + l, o * L + m] += float(w[o, c, k])
    return A


def split_even_odd(M, b, C, L):
    """Column-split a conv Toeplitz matrix into even/odd output positions so
    MaxPool1d(2,2) becomes tanh(max(x@Me, x@Mo) + b), with the pooled layout
    c*(L//2)+j matching the next layer's expected flattened input layout."""
    assert L % 2 == 0
    Lh = L // 2
    cols = np.arange(C * L).reshape(C, Lh, 2)
    idx_e = cols[:, :, 0].reshape(-1)     # c*L + 2j   ->  pooled index c*Lh + j
    idx_o = cols[:, :, 1].reshape(-1)     # c*L + 2j+1
    Me = np.ascontiguousarray(M[:, idx_e])
    Mo = np.ascontiguousarray(M[:, idx_o])
    bh = np.repeat(np.asarray(b, np.float32), Lh)
    return Me, Mo, bh


def _pad_to(M, rows, cols):
    out = np.zeros((rows, cols), np.float32)
    out[:M.shape[0], :M.shape[1]] = M
    return out


def build_flat_params(p, in_size=IN_SIZE):
    """Build the fused, 128-aligned, bf16 weight matrices the kernel consumes.

    All padded rows/columns are zero-filled, and the padded bias entries are
    zero, so padded activation lanes stay exactly 0 through every layer and
    contribute nothing to later matmuls."""
    assert in_size % 4 == 0, "pooling trick needs even per-channel lengths"
    L1, L2, L3 = in_size, in_size // 2, in_size // 4
    r128 = lambda n: _round_up(n, 128)

    # layer 1: conv(1 -> 16), pooled.  K padded 100 -> 128, N halves 800 -> 896.
    M1 = conv1d_as_matrix(np.asarray(p["w1"]), L1)                    # (100, 1600)
    M1e, M1o, b1 = split_even_odd(M1, p["b1"], 16, L1)                # (100, 800)
    n1 = r128(16 * (L1 // 2))                                         # 896
    M1eo = np.concatenate([_pad_to(M1e, F_PAD, n1),
                           _pad_to(M1o, F_PAD, n1)], axis=1)          # (128, 1792)
    B1 = _pad_to(b1[None, :], 1, n1)

    # layer 2: conv(16 -> 8), pooled.  K 800 -> 896, N halves 200 -> 256.
    M2 = conv1d_as_matrix(np.asarray(p["w2"]), L2)                    # (800, 400)
    M2e, M2o, b2 = split_even_odd(M2, p["b2"], 8, L2)                 # (800, 200)
    n2 = r128(8 * (L2 // 2))                                          # 256
    M2eo = np.concatenate([_pad_to(M2e, n1, n2),
                           _pad_to(M2o, n1, n2)], axis=1)             # (896, 512)
    B2 = _pad_to(b2[None, :], 1, n2)

    # layer 3: conv(8 -> 4), no pool.  K 200 -> 256, N 100 -> 128.
    M3 = conv1d_as_matrix(np.asarray(p["w3"]), L3)                    # (200, 100)
    n3 = r128(4 * L3)                                                 # 128
    M3p = _pad_to(M3, n2, n3)
    B3 = _pad_to(np.repeat(np.asarray(p["b3"], np.float32), L3)[None, :], 1, n3)

    # fc: K 100 -> 128, N out_size -> 128 (lane-dense output block).
    Wfc = np.asarray(p["wfc"]).T.astype(np.float32)                   # (100, out)
    Wfcp = _pad_to(Wfc, n3, OUT_PAD)
    Bfc = _pad_to(np.asarray(p["bfc"], np.float32)[None, :], 1, OUT_PAD)

    bf16 = lambda a: jnp.asarray(a, jnp.bfloat16)
    f32 = lambda a: jnp.asarray(a, jnp.float32)
    return [bf16(M1eo), f32(B1),
            bf16(M2eo), f32(B2),
            bf16(M3p), f32(B3),
            bf16(Wfcp), f32(Bfc)]


# ---------------------------------------------------------------------------
# Pallas kernel: entire encoder forward for one batch tile
# ---------------------------------------------------------------------------
def encoder_kernel(x_ref, m1_ref, b1_ref, m2_ref, b2_ref,
                   m3_ref, b3_ref, wfc_ref, bfc_ref, o_ref):
    f32 = jnp.float32
    bf16 = jnp.bfloat16

    x = x_ref[...]                                               # (bt, 128) bf16

    # conv1 (even|odd fused into one wide bf16 matmul) -> max -> +bias -> tanh
    n1 = m1_ref.shape[1] // 2
    r1 = jnp.dot(x, m1_ref[...], preferred_element_type=f32)     # (bt, 2*n1) f32
    p1 = jnp.tanh(jnp.maximum(r1[:, :n1], r1[:, n1:]) + b1_ref[...])

    # conv2 + maxpool(2,2), same fused form
    n2 = m2_ref.shape[1] // 2
    r2 = jnp.dot(p1.astype(bf16), m2_ref[...], preferred_element_type=f32)
    p2 = jnp.tanh(jnp.maximum(r2[:, :n2], r2[:, n2:]) + b2_ref[...])

    # conv3 + tanh (flattened result == PyTorch view(B, 1, -1))
    h3 = jnp.tanh(jnp.dot(p2.astype(bf16), m3_ref[...],
                          preferred_element_type=f32) + b3_ref[...])

    # fc into a lane-dense 128-wide f32 output block
    o_ref[...] = jnp.dot(h3.astype(bf16), wfc_ref[...],
                         preferred_element_type=f32) + bfc_ref[...]


def conv_encoder_pallas(x, flat_params, out_size=OUT_SIZE, batch_tile=BATCH_TILE):
    B, F = x.shape
    assert F == IN_SIZE

    # Batch-tile selection:
    #   * multiples of 16 (bf16 sublane tiling),
    #   * >= 2 grid steps for mid/large batches (v7x megacore sharding),
    #   * no over-padding for tiny batches.
    bt_two_steps = max(_round_up((B + 1) // 2, 16), 128)
    bt = min(batch_tile, bt_two_steps, _round_up(B, 16))
    Bp = _round_up(B, bt)

    # Pad + cast the input once in the wrapper; kernel consumes bf16 directly.
    xp = jnp.zeros((Bp, F_PAD), jnp.bfloat16).at[:B, :F].set(x.astype(jnp.bfloat16))

    const_specs = [pl.BlockSpec(a.shape, lambda i: (0, 0)) for a in flat_params]

    # Advisory cost estimate (bf16 matmuls, tanh once per pooled layer).
    mat_elems = sum(int(a.shape[0]) * int(a.shape[1])
                    for a in flat_params if a.shape[0] > 1)
    tanh_cols = (flat_params[0].shape[1] // 2 + flat_params[2].shape[1] // 2
                 + flat_params[4].shape[1])
    weight_bytes = sum(int(np.prod(a.shape)) * a.dtype.itemsize for a in flat_params)
    cost = pl.CostEstimate(
        flops=int(2 * Bp * mat_elems),
        transcendentals=int(Bp * tanh_cols),
        bytes_accessed=int(weight_bytes + Bp * (F_PAD * 2 + OUT_PAD * 4)),
    )

    out = pl.pallas_call(
        encoder_kernel,
        out_shape=jax.ShapeDtypeStruct((Bp, OUT_PAD), jnp.float32),
        grid=(Bp // bt,),
        in_specs=[pl.BlockSpec((bt, F_PAD), lambda i: (i, 0))] + const_specs,
        out_specs=pl.BlockSpec((bt, OUT_PAD), lambda i: (i, 0)),
        compiler_params=pltpu.CompilerParams(
            dimension_semantics=("parallel",),
            vmem_limit_bytes=32 * 1024 * 1024),
        cost_estimate=cost,
    )(xp, *flat_params)
    return out[:B, :out_size]


# ---------------------------------------------------------------------------
# Pure-JAX reference (mirrors the PyTorch forward exactly, f32 math)
# ---------------------------------------------------------------------------
def ref_forward(x, p):
    def conv1d(h, w, b):
        hp = jnp.pad(h, ((0, 0), (0, 0), (1, 1)))
        L = h.shape[2]
        out = sum(jnp.einsum('oc,bcl->bol', w[:, :, k], hp[:, :, k:k + L])
                  for k in range(3))
        return out + b[None, :, None]

    h = x[:, None, :]                                # view(-1, 1, in_size)
    h = jnp.tanh(conv1d(h, p["w1"], p["b1"]))
    h = jnp.maximum(h[:, :, 0::2], h[:, :, 1::2])    # MaxPool1d(2,2)
    h = jnp.tanh(conv1d(h, p["w2"], p["b2"]))
    h = jnp.maximum(h[:, :, 0::2], h[:, :, 1::2])
    h = jnp.tanh(conv1d(h, p["w3"], p["b3"]))
    h = h.reshape(h.shape[0], -1)                    # view(B, 1, -1)
    return h @ p["wfc"].T + p["bfc"]                 # Linear(100, out_size)


if __name__ == "__main__":
    key = jax.random.PRNGKey(0)
    pkey, xkey = jax.random.split(key)

    params = make_params(pkey)
    params_q = quantize_weights(params)      # kernel stores matmul weights in bf16
    flat = build_flat_params(params_q)

    B = 2
    x = jax.random.normal(xkey, (B, IN_SIZE), jnp.float32)

    y = conv_encoder_pallas(x, flat)
    y = jax.block_until_ready(y)

    # Reference uses the same bf16-rounded weights but f32 activations; the
    # kernel additionally rounds activations to bf16 for the MXU, so compare
    # with a tolerance loose enough for bf16-activation matmuls (f32 accumulate).
    y_ref = ref_forward(x, params_q)
    assert y.shape == (B, OUT_SIZE)
    np.testing.assert_allclose(np.asarray(y), np.asarray(y_ref), rtol=1e-2, atol=1e-2)

    print("KERNEL_OK")
</pallas_src>

<mosaic_0001>
module attributes {stable_mosaic.version = 11 : i64} {
  func.func @encoder_kernel(%arg0: i32, %arg1: memref<16x128xbf16, #tpu.memory_space<vmem>>, %arg2: memref<128x1792xbf16, #tpu.memory_space<vmem>>, %arg3: memref<1x896xf32, #tpu.memory_space<vmem>>, %arg4: memref<896x512xbf16, #tpu.memory_space<vmem>>, %arg5: memref<1x256xf32, #tpu.memory_space<vmem>>, %arg6: memref<256x128xbf16, #tpu.memory_space<vmem>>, %arg7: memref<1x128xf32, #tpu.memory_space<vmem>>, %arg8: memref<128x128xbf16, #tpu.memory_space<vmem>>, %arg9: memref<1x128xf32, #tpu.memory_space<vmem>>, %arg10: memref<16x128xf32, #tpu.memory_space<vmem>>) attributes {dimension_semantics = [#tpu.dimension_semantics<parallel>], iteration_bounds = array<i64: 1>, scalar_prefetch = 0 : i64, scratch_operands = 0 : i64, tpu.core_type = #tpu.core_type<tc>, window_params = [{transform_indices = @transform_0, window_bounds = array<i64: 16, 128>}, {pipeline_mode = #tpu.pipeline_mode<synchronous>, transform_indices = @transform_1, window_bounds = array<i64: 128, 1792>}, {pipeline_mode = #tpu.pipeline_mode<synchronous>, transform_indices = @transform_2, window_bounds = array<i64: 1, 896>}, {pipeline_mode = #tpu.pipeline_mode<synchronous>, transform_indices = @transform_3, window_bounds = array<i64: 896, 512>}, {pipeline_mode = #tpu.pipeline_mode<synchronous>, transform_indices = @transform_4, window_bounds = array<i64: 1, 256>}, {pipeline_mode = #tpu.pipeline_mode<synchronous>, transform_indices = @transform_5, window_bounds = array<i64: 256, 128>}, {pipeline_mode = #tpu.pipeline_mode<synchronous>, transform_indices = @transform_6, window_bounds = array<i64: 1, 128>}, {pipeline_mode = #tpu.pipeline_mode<synchronous>, transform_indices = @transform_7, window_bounds = array<i64: 128, 128>}, {pipeline_mode = #tpu.pipeline_mode<synchronous>, transform_indices = @transform_8, window_bounds = array<i64: 1, 128>}, {transform_indices = @transform_9, window_bounds = array<i64: 16, 128>}]} {
    %c0 = arith.constant 0 : index
    %c0_0 = arith.constant 0 : index
    %0 = vector.load %arg1[%c0, %c0_0] : memref<16x128xbf16, #tpu.memory_space<vmem>>, vector<16x128xbf16>
    %c0_1 = arith.constant 0 : index
    %c0_2 = arith.constant 0 : index
    %1 = vector.load %arg2[%c0_1, %c0_2] : memref<128x1792xbf16, #tpu.memory_space<vmem>>, vector<128x1792xbf16>
    %cst = arith.constant dense<0.000000e+00> : vector<16x1792xf32>
    %2 = tpu.matmul %0, %1, %cst {dimension_numbers = #tpu.dot_dimension_numbers<[1], [0], [0], [1], [0, 0, 1, 1], [], []>} : vector<16x128xbf16>, vector<128x1792xbf16>, vector<16x1792xf32> -> vector<16x1792xf32>
    %3 = vector.extract_strided_slice %2 {offsets = [0, 0], sizes = [16, 896], strides = [1, 1]} : vector<16x1792xf32> to vector<16x896xf32>
    %4 = vector.extract_strided_slice %2 {offsets = [0, 896], sizes = [16, 896], strides = [1, 1]} : vector<16x1792xf32> to vector<16x896xf32>
    %5 = arith.maximumf %3, %4 : vector<16x896xf32>
    %c0_3 = arith.constant 0 : index
    %c0_4 = arith.constant 0 : index
    %6 = vector.load %arg3[%c0_3, %c0_4] : memref<1x896xf32, #tpu.memory_space<vmem>>, vector<1x896xf32>
    %7 = vector.broadcast %6 : vector<1x896xf32> to vector<16x896xf32>
    %8 = arith.addf %5, %7 : vector<16x896xf32>
    %9 = math.tanh %8 : vector<16x896xf32>
    %10 = arith.truncf %9 : vector<16x896xf32> to vector<16x896xbf16>
    %c0_5 = arith.constant 0 : index
    %c0_6 = arith.constant 0 : index
    %11 = vector.load %arg4[%c0_5, %c0_6] : memref<896x512xbf16, #tpu.memory_space<vmem>>, vector<896x512xbf16>
    %cst_7 = arith.constant dense<0.000000e+00> : vector<16x512xf32>
    %12 = tpu.matmul %10, %11, %cst_7 {dimension_numbers = #tpu.dot_dimension_numbers<[1], [0], [0], [1], [0, 0, 1, 1], [], []>} : vector<16x896xbf16>, vector<896x512xbf16>, vector<16x512xf32> -> vector<16x512xf32>
    %13 = vector.extract_strided_slice %12 {offsets = [0, 0], sizes = [16, 256], strides = [1, 1]} : vector<16x512xf32> to vector<16x256xf32>
    %14 = vector.extract_strided_slice %12 {offsets = [0, 256], sizes = [16, 256], strides = [1, 1]} : vector<16x512xf32> to vector<16x256xf32>
    %15 = arith.maximumf %13, %14 : vector<16x256xf32>
    %c0_8 = arith.constant 0 : index
    %c0_9 = arith.constant 0 : index
    %16 = vector.load %arg5[%c0_8, %c0_9] : memref<1x256xf32, #tpu.memory_space<vmem>>, vector<1x256xf32>
    %17 = vector.broadcast %16 : vector<1x256xf32> to vector<16x256xf32>
    %18 = arith.addf %15, %17 : vector<16x256xf32>
    %19 = math.tanh %18 : vector<16x256xf32>
    %20 = arith.truncf %19 : vector<16x256xf32> to vector<16x256xbf16>
    %c0_10 = arith.constant 0 : index
    %c0_11 = arith.constant 0 : index
    %21 = vector.load %arg6[%c0_10, %c0_11] : memref<256x128xbf16, #tpu.memory_space<vmem>>, vector<256x128xbf16>
    %cst_12 = arith.constant dense<0.000000e+00> : vector<16x128xf32>
    %22 = tpu.matmul %20, %21, %cst_12 {dimension_numbers = #tpu.dot_dimension_numbers<[1], [0], [0], [1], [0, 0, 1, 1], [], []>} : vector<16x256xbf16>, vector<256x128xbf16>, vector<16x128xf32> -> vector<16x128xf32>
    %c0_13 = arith.constant 0 : index
    %c0_14 = arith.constant 0 : index
    %23 = vector.load %arg7[%c0_13, %c0_14] : memref<1x128xf32, #tpu.memory_space<vmem>>, vector<1x128xf32>
    %24 = vector.broadcast %23 : vector<1x128xf32> to vector<16x128xf32>
    %25 = arith.addf %22, %24 : vector<16x128xf32>
    %26 = math.tanh %25 : vector<16x128xf32>
    %27 = arith.truncf %26 : vector<16x128xf32> to vector<16x128xbf16>
    %c0_15 = arith.constant 0 : index
    %c0_16 = arith.constant 0 : index
    %28 = vector.load %arg8[%c0_15, %c0_16] : memref<128x128xbf16, #tpu.memory_space<vmem>>, vector<128x128xbf16>
    %cst_17 = arith.constant dense<0.000000e+00> : vector<16x128xf32>
    %29 = tpu.matmul %27, %28, %cst_17 {dimension_numbers = #tpu.dot_dimension_numbers<[1], [0], [0], [1], [0, 0, 1, 1], [], []>} : vector<16x128xbf16>, vector<128x128xbf16>, vector<16x128xf32> -> vector<16x128xf32>
    %c0_18 = arith.constant 0 : index
    %c0_19 = arith.constant 0 : index
    %30 = vector.load %arg9[%c0_18, %c0_19] : memref<1x128xf32, #tpu.memory_space<vmem>>, vector<1x128xf32>
    %31 = vector.broadcast %30 : vector<1x128xf32> to vector<16x128xf32>
    %32 = arith.addf %29, %31 : vector<16x128xf32>
    %c0_20 = arith.constant 0 : index
    %c0_21 = arith.constant 0 : index
    %33 = vector.load %arg10[%c0_20, %c0_21] : memref<16x128xf32, #tpu.memory_space<vmem>>, vector<16x128xf32>
    tpu.vector_store %arg10[%c0_20, %c0_21], %32 {strides = array<i32>} : memref<16x128xf32, #tpu.memory_space<vmem>>, vector<16x128xf32>,
    return
  }
  func.func @transform_0(%arg0: i32) -> (i32, i32) {
    %c0_i32 = arith.constant 0 : i32
    %c0_i32_0 = arith.constant 0 : i32
    return %arg0, %c0_i32 : i32, i32
  }
  func.func @transform_1(%arg0: i32) -> (i32, i32) {
    %c0_i32 = arith.constant 0 : i32
    %c0_i32_0 = arith.constant 0 : i32
    %c0_i32_1 = arith.constant 0 : i32
    return %c0_i32, %c0_i32_0 : i32, i32
  }
  func.func @transform_2(%arg0: i32) -> (i32, i32) {
    %c0_i32 = arith.constant 0 : i32
    %c0_i32_0 = arith.constant 0 : i32
    %c0_i32_1 = arith.constant 0 : i32
    return %c0_i32, %c0_i32_0 : i32, i32
  }
  func.func @transform_3(%arg0: i32) -> (i32, i32) {
    %c0_i32 = arith.constant 0 : i32
    %c0_i32_0 = arith.constant 0 : i32
    %c0_i32_1 = arith.constant 0 : i32
    return %c0_i32, %c0_i32_0 : i32, i32
  }
  func.func @transform_4(%arg0: i32) -> (i32, i32) {
    %c0_i32 = arith.constant 0 : i32
    %c0_i32_0 = arith.constant 0 : i32
    %c0_i32_1 = arith.constant 0 : i32
    return %c0_i32, %c0_i32_0 : i32, i32
  }
  func.func @transform_5(%arg0: i32) -> (i32, i32) {
    %c0_i32 = arith.constant 0 : i32
    %c0_i32_0 = arith.constant 0 : i32
    %c0_i32_1 = arith.constant 0 : i32
    return %c0_i32, %c0_i32_0 : i32, i32
  }
  func.func @transform_6(%arg0: i32) -> (i32, i32) {
    %c0_i32 = arith.constant 0 : i32
    %c0_i32_0 = arith.constant 0 : i32
    %c0_i32_1 = arith.constant 0 : i32
    return %c0_i32, %c0_i32_0 : i32, i32
  }
  func.func @transform_7(%arg0: i32) -> (i32, i32) {
    %c0_i32 = arith.constant 0 : i32
    %c0_i32_0 = arith.constant 0 : i32
    %c0_i32_1 = arith.constant 0 : i32
    return %c0_i32, %c0_i32_0 : i32, i32
  }
  func.func @transform_8(%arg0: i32) -> (i32, i32) {
    %c0_i32 = arith.constant 0 : i32
    %c0_i32_0 = arith.constant 0 : i32
    %c0_i32_1 = arith.constant 0 : i32
    return %c0_i32, %c0_i32_0 : i32, i32
  }
  func.func @transform_9(%arg0: i32) -> (i32, i32) {
    %c0_i32 = arith.constant 0 : i32
    %c0_i32_0 = arith.constant 0 : i32
    return %arg0, %c0_i32 : i32, i32
  }
}

</mosaic_0001>

<bundles_post_ra>
// kernel: tpu_custom_call.1
= control target key start
LH: loop header
LB: loop body
LE: loop exit
PB: predicated region body
PF: predicated region fallthrough
CT: control target
= control target key end

     0   :  { %14 = vsyncpa [#allocation3], 0  ;;  %s4591_s0 = inlined_call_operand.hbm [shape: bf16[16,128], index: 0, kind: input, shape index: {}]   ;;  %s4592_s1 = inlined_call_operand.hbm [shape: bf16[128,1792], index: 1, kind: input, shape index: {}]   ;;  %s4593_s2 = inlined_call_operand.vmem [shape: f32[1,896], index: 2, kind: input, shape index: {}]   ;;  %s4594_s3 = inlined_call_operand.hbm [shape: bf16[896,512], index: 3, kind: input, shape index: {}]   ;;  %s4595_s4 = inlined_call_operand.vmem [shape: f32[1,256], index: 4, kind: input, shape index: {}]   ;;  %s4596_s5 = inlined_call_operand.hbm [shape: bf16[256,128], index: 5, kind: input, shape index: {}]   ;;  %s4597_s6 = inlined_call_operand.vmem [shape: f32[1,128], index: 6, kind: input, shape index: {}]   ;;  %s4598_s7 = inlined_call_operand.hbm [shape: bf16[128,128], index: 7, kind: input, shape index: {}]   ;;  %s4599_s8 = inlined_call_operand.vmem [shape: f32[1,128], index: 8, kind: input, shape index: {}]   ;;  %s4600_s9 = inlined_call_operand.hbm [shape: f32[16,128], index: 9, kind: output, shape index: {}]  }
   0x1   :  { %15 = vsyncpa [#allocation6], 0 }
   0x2   :  { %16 = vsyncpa [#allocation9], 0 }
   0x3   :  { %17 = vsyncpa [#allocation4], 0  ;;  %s4359_s30 = smov [#allocation5]   ;;  %s4219_s13 = scalar_lea.hbm %s4592_s1, 14336 }
   0x4   :  { %s35_s10 = sshll.u32 %s4359_s30, 4  ;;  %p4220_p0 = scmp.ne.s32.totalorder %s4592_s1, %s4219_s13  ;;  %s36_s10 = int_to_ptr.vmem [resolvable:$true] %s35_s10 }
   0x5   :  { %p4223_p1 = scmp.lt.u32.totalorder %s4219_s13, %s4592_s1 }
   0x7   :  { %p4225_p2 = pnand %p4223_p1, %p4220_p0 }
   0x9   :  { %4228 = shalt.err (!%p4225_p2)
}
   0xa   :  { %s4229_s18 = scalar_lea.vmem %s36_s10, 14336  ;;  %p4234_p4 = scmp.lt.s32.totalorder %s36_s10, %s36_s10 }
   0xb   :  { %p4230_p3 = scmp.ne.s32.totalorder %s36_s10, %s4229_s18  ;;  %p4235_p5 = scmp.lt.s32.totalorder %s4229_s18, %s4229_s18 }
   0xd   :  { %p4236_p6 = por %p4235_p5, %p4234_p4 }
   0xf   :  { %p4237_p7 = pnand %p4236_p6, %p4230_p3 }
  0x11   :  { %4240 = shalt.err (!%p4237_p7)
}
  0x12   :  { %s4360_s19 = smov 896   ;;  %s4361_s20 = smov 56  }
  0x13   :  { %41 = dma.hbm_to_vmem [thread:$0]  %s4592_s1, 14336, %s36_s10, [#allocation6], %s4360_s19, %s4360_s19, %s4361_s20  }
  0x14   :  { %s4362_s23 = smov [#allocation8]   ;;  %s4363_s25 = smov [#allocation2]  }
  0x15   :  { %s63_s24 = sshll.u32 %s4362_s23, 4  ;;  %s23_s26 = sshll.u32 %s4363_s25, 4  ;;  %s64_s24 = int_to_ptr.vmem [resolvable:$true] %s63_s24  ;;  %s24_s26 = int_to_ptr.vmem [resolvable:$true] %s23_s26 }
  0x16   :  { %s4241_s29 = scalar_lea.hbm %s4596_s5, 2048 }
  0x17   :  { %p4242_p8 = scmp.ne.s32.totalorder %s4596_s5, %s4241_s29  ;;  %p4245_p9 = scmp.lt.u32.totalorder %s4241_s29, %s4596_s5 }
  0x19   :  { %p4247_p10 = pnand %p4245_p9, %p4242_p8 }
  0x1b   :  { %4250 = shalt.err (!%p4247_p10)
}
  0x1c   :  { %s4251_s1 = scalar_lea.vmem %s64_s24, 2048  ;;  %p4256_p12 = scmp.lt.s32.totalorder %s64_s24, %s64_s24 }
  0x1d   :  { %p4252_p11 = scmp.ne.s32.totalorder %s64_s24, %s4251_s1  ;;  %p4257_p13 = scmp.lt.s32.totalorder %s4251_s1, %s4251_s1 }
  0x1f   :  { %p4258_p0 = por %p4257_p13, %p4256_p12 }
  0x21   :  { %p4259_p1 = pnand %p4258_p0, %p4252_p11 }
  0x23   :  { %4262 = shalt.err (!%p4259_p1)
}
  0x24   :  { %s4364_s10 = smov 64   ;;  %s4365_s14 = smov 4  }
  0x25   :  { %69 = dma.hbm_to_vmem [thread:$0]  %s4596_s5, 2048, %s64_s24, [#allocation9], %s4364_s10, %s4364_s10, %s4365_s14  }
  0x26   :  { %s4263_s19 = scalar_lea.hbm %s4591_s0, 128 }
  0x27   :  { %p4264_p2 = scmp.ne.s32.totalorder %s4591_s0, %s4263_s19  ;;  %p4267_p3 = scmp.lt.u32.totalorder %s4263_s19, %s4591_s0 }
  0x29   :  { %p4269_p4 = pnand %p4267_p3, %p4264_p2 }
  0x2b   :  { %4272 = shalt.err (!%p4269_p4)
}
  0x2c   :  { %s4273_s25 = scalar_lea.vmem %s24_s26, 128  ;;  %p4278_p6 = scmp.lt.s32.totalorder %s24_s26, %s24_s26 }
  0x2d   :  { %p4274_p5 = scmp.ne.s32.totalorder %s24_s26, %s4273_s25  ;;  %p4279_p7 = scmp.lt.s32.totalorder %s4273_s25, %s4273_s25 }
  0x2f   :  { %p4280_p8 = por %p4279_p7, %p4278_p6 }
  0x31   :  { %p4281_p9 = pnand %p4280_p8, %p4274_p5 }
  0x33   :  { %4284 = shalt.err (!%p4281_p9)
}
  0x34   :  { %29 = dma.hbm_to_vmem [thread:$0]  %s4591_s0, 128, %s24_s26, [#allocation3], %s4364_s10, %s4364_s10, %s4365_s14  }
  0x35   :  { %s4366_s27 = smov [#allocation7]   ;;  %s4285_s11 = scalar_lea.hbm %s4594_s3, 28672 }
  0x36   :  { %s49_s28 = sshll.u32 %s4366_s27, 4  ;;  %p4286_p10 = scmp.ne.s32.totalorder %s4594_s3, %s4285_s11  ;;  %s50_s28 = int_to_ptr.vmem [resolvable:$true] %s49_s28 }
  0x37   :  { %p4289_p11 = scmp.lt.u32.totalorder %s4285_s11, %s4594_s3 }
  0x39   :  { %p4291_p12 = pnand %p4289_p11, %p4286_p10 }
  0x3b   :  { %4294 = shalt.err (!%p4291_p12)
}
  0x3c   :  { %s4295_s16 = scalar_lea.vmem %s50_s28, 28672  ;;  %p4300_p0 = scmp.lt.s32.totalorder %s50_s28, %s50_s28 }
  0x3d   :  { %p4296_p13 = scmp.ne.s32.totalorder %s50_s28, %s4295_s16  ;;  %p4301_p1 = scmp.lt.s32.totalorder %s4295_s16, %s4295_s16 }
  0x3f   :  { %p4302_p2 = por %p4301_p1, %p4300_p0 }
  0x41   :  { %p4303_p3 = pnand %p4302_p2, %p4296_p13 }
  0x43   :  { %4306 = shalt.err (!%p4303_p3)
}
  0x44   :  { %s4367_s0 = smov 256   ;;  %s4368_s26 = smov 16  }
  0x45   :  { %55 = dma.hbm_to_vmem [thread:$0]  %s4594_s3, 28672, %s50_s28, [#allocation6], %s4367_s0, %s4367_s0, %s4368_s26  }
  0x46   :  { %s4369_s19 = smov [#allocation10]   ;;  %s4307_s23 = scalar_lea.hbm %s4598_s7, 1024 }
  0x47   :  { %s77_s20 = sshll.u32 %s4369_s19, 4  ;;  %p4308_p4 = scmp.ne.s32.totalorder %s4598_s7, %s4307_s23  ;;  %s78_s20 = int_to_ptr.vmem [resolvable:$true] %s77_s20 }
  0x48   :  { %p4311_p5 = scmp.lt.u32.totalorder %s4307_s23, %s4598_s7 }
  0x4a   :  { %p4313_p6 = pnand %p4311_p5, %p4308_p4 }
  0x4c   :  { %4316 = shalt.err (!%p4313_p6)
}
  0x4d   :  { %s4317_s29 = scalar_lea.vmem %s78_s20, 1024  ;;  %p4322_p8 = scmp.lt.s32.totalorder %s78_s20, %s78_s20 }
  0x4e   :  { %p4318_p7 = scmp.ne.s32.totalorder %s78_s20, %s4317_s29  ;;  %p4323_p9 = scmp.lt.s32.totalorder %s4317_s29, %s4317_s29 }
  0x50   :  { %p4324_p10 = por %p4323_p9, %p4322_p8 }
  0x52   :  { %p4325_p11 = pnand %p4324_p10, %p4318_p7 }
  0x54   :  { %4328 = shalt.err (!%p4325_p11)
}
  0x55   :  { %83 = dma.hbm_to_vmem [thread:$0]  %s4598_s7, 1024, %s78_s20, [#allocation9], %s4364_s10, %s4364_s10, %s4365_s14  }
  0x56   :  { %4351 = dma.done.wait [#allocation3], 128  }
  0x57   :  { %4352 = vsyncadd [#allocation3], 4294967168 }
  0x58   :  { %4353 = dma.done.wait [#allocation6], 43008  }
  0x59   :  { %4354 = vsyncadd [#allocation6], 4294924288 }
  0x5a   :  { %4355 = dma.done.wait [#allocation9], 3072  }
  0x5b   :  { %4356 = vsyncadd [#allocation9], 4294964224  ;;  %v4370_v0 = vmov 0   ;;  %v3650_v1 = vld [vmem:[#allocation5 + $0x4] ss:$56 sps:$4 sm:$0xff]   ;;  %vm4372_vm0 = vmmov 0  }
  0x5c   :  { %814 = vmatprep.mubr.bf16.mxu0 %v4370_v0  ;;  %857 = vmatprep.mubr.bf16.mxu1 %v4370_v0  ;;  %v3652_v2 = vld [vmem:[#allocation5 + $0xc] ss:$56 sps:$4 sm:$0xff]   ;;  %v3654_v3 = vld [vmem:[#allocation5] ss:$56 sps:$4 sm:$0xff]   ;;  %v3658_v6 = vld [vmem:[#allocation5 + $0x7c] ss:$56 sps:$4 sm:$0xff]  }
  0x5d   :  { %782 = vmatprep.subr.bf16.mxu0 %v3650_v1  ;;  %v3655_v4 = vld [vmem:[#allocation5 + $0x8] ss:$56 sps:$4 sm:$0xff]   ;;  %825 = vmatprep.subr.bf16.mxu1 %v3652_v2  ;;  %v3656_v5 = vld [vmem:[#allocation5 + $0x74] ss:$56 sps:$4 sm:$0xff]   ;;  %v3661_v8 = vld [vmem:[#allocation5 + $0x78] ss:$56 sps:$4 sm:$0xff]  }
  0x5e   :  { %783 = vmatpush1.bf16.msra.mxu0 %v3654_v3  ;;  %826 = vmatpush1.bf16.msra.mxu1 %v3655_v4  ;;  %v3660_v7 = vld [vmem:[#allocation5 + $0x70] ss:$56 sps:$4 sm:$0xff]   ;;  %v3662_v9 = vld [vmem:[#allocation5 + $0xe4] ss:$56 sps:$4 sm:$0xff]   ;;  %v3666_v11 = vld [vmem:[#allocation5 + $0xe0] ss:$56 sps:$4 sm:$0xff]  }
  0x5f   :  { %784 = vmatprep.subr.bf16.mxu0 %v3656_v5  ;;  %827 = vmatprep.subr.bf16.mxu1 %v3658_v6  ;;  %v3664_v10 = vld [vmem:[#allocation5 + $0xec] ss:$56 sps:$4 sm:$0xff]   ;;  %v3667_v12 = vld [vmem:[#allocation5 + $0xe8] ss:$56 sps:$4 sm:$0xff]   ;;  %v3670_v14 = vld [vmem:[#allocation5 + $0x15c] ss:$56 sps:$4 sm:$0xff]  }
  0x60   :  { %v3668_v13 = vld [vmem:[#allocation5 + $0x154] ss:$56 sps:$4 sm:$0xff]   ;;  %v3672_v15 = vld [vmem:[#allocation5 + $0x150] ss:$56 sps:$4 sm:$0xff]   ;;  %v3674_v17 = vld [vmem:[#allocation5 + $0x1c4] ss:$56 sps:$4 sm:$0xff]  }
  0x61   :  { %v3673_v16 = vld [vmem:[#allocation5 + $0x158] ss:$56 sps:$4 sm:$0xff]   ;;  %v3676_v18 = vld [vmem:[#allocation5 + $0x1cc] ss:$56 sps:$4 sm:$0xff]   ;;  %v3679_v20 = vld [vmem:[#allocation5 + $0x1c8] ss:$56 sps:$4 sm:$0xff]  }
  0x62   :  { %785 = vmatpush1.bf16.msra.mxu0 %v3660_v7  ;;  %828 = vmatpush1.bf16.msra.mxu1 %v3661_v8  ;;  %v3678_v19 = vld [vmem:[#allocation5 + $0x1c0] ss:$56 sps:$4 sm:$0xff]   ;;  %v3680_v21 = vld [vmem:[#allocation5 + $0x234] ss:$56 sps:$4 sm:$0xff]   ;;  %v3684_v23 = vld [vmem:[#allocation5 + $0x230] ss:$56 sps:$4 sm:$0xff]  }
  0x63   :  { %786 = vmatprep.subr.bf16.mxu0 %v3662_v9  ;;  %829 = vmatprep.subr.bf16.mxu1 %v3664_v10  ;;  %v3682_v22 = vld [vmem:[#allocation5 + $0x23c] ss:$56 sps:$4 sm:$0xff]   ;;  %v3685_v24 = vld [vmem:[#allocation5 + $0x238] ss:$56 sps:$4 sm:$0xff]   ;;  %v3688_v26 = vld [vmem:[#allocation5 + $0x2ac] ss:$56 sps:$4 sm:$0xff]  }
  0x64   :  { %v3686_v25 = vld [vmem:[#allocation5 + $0x2a4] ss:$56 sps:$4 sm:$0xff]   ;;  %v3690_v27 = vld [vmem:[#allocation5 + $0x2a0] ss:$56 sps:$4 sm:$0xff]   ;;  %v3692_v29 = vld [vmem:[#allocation5 + $0x314] ss:$56 sps:$4 sm:$0xff]  }
  0x65   :  { %v3691_v28 = vld [vmem:[#allocation5 + $0x2a8] ss:$56 sps:$4 sm:$0xff]   ;;  %v3694_v30 = vld [vmem:[#allocation5 + $0x31c] ss:$56 sps:$4 sm:$0xff]   ;;  %v3697_v32 = vld [vmem:[#allocation5 + $0x318] ss:$56 sps:$4 sm:$0xff]  }
  0x66   :  { %787 = vmatpush1.bf16.msra.mxu0 %v3666_v11  ;;  %830 = vmatpush1.bf16.msra.mxu1 %v3667_v12  ;;  %v3696_v31 = vld [vmem:[#allocation5 + $0x310] ss:$56 sps:$4 sm:$0xff]   ;;  %v3701_v33 = vld [vmem:[#allocation5 + $0x14] ss:$56 sps:$4 sm:$0xff]   ;;  %v4497_v35 = vld [vmem:[#allocation2] sm:$0xff]   ;;  %s4373_s13 = smov [#allocation11]  }
  0x67   :  { %788 = vmatprep.subr.bf16.mxu0 %v3668_v13  ;;  %831 = vmatprep.subr.bf16.mxu1 %v3670_v14  ;;  %v3704_v34 = vld [vmem:[#allocation5 + $0x1c] ss:$56 sps:$4 sm:$0xff]   ;;  %v3699_v36 = vld [vmem:[#allocation5 + $0x10] ss:$56 sps:$4 sm:$0xff]   ;;  %v3710_v39 = vld [vmem:[#allocation5 + $0x8c] ss:$56 sps:$4 sm:$0xff]  }
  0x68   :  { %v3702_v37 = vld [vmem:[#allocation5 + $0x18] ss:$56 sps:$4 sm:$0xff]   ;;  %v3707_v38 = vld [vmem:[#allocation5 + $0x84] ss:$56 sps:$4 sm:$0xff]   ;;  %v3708_v41 = vld [vmem:[#allocation5 + $0x88] ss:$56 sps:$4 sm:$0xff]  }
  0x69   :  { %v3705_v40 = vld [vmem:[#allocation5 + $0x80] ss:$56 sps:$4 sm:$0xff]   ;;  %v3713_v42 = vld [vmem:[#allocation5 + $0xf4] ss:$56 sps:$4 sm:$0xff]   ;;  %v3711_v44 = vld [vmem:[#allocation5 + $0xf0] ss:$56 sps:$4 sm:$0xff]  }
  0x6a   :  { %789 = vmatpush1.bf16.msra.mxu0 %v3672_v15  ;;  %832 = vmatpush1.bf16.msra.mxu1 %v3673_v16  ;;  %v3716_v43 = vld [vmem:[#allocation5 + $0xfc] ss:$56 sps:$4 sm:$0xff]   ;;  %v3714_v45 = vld [vmem:[#allocation5 + $0xf8] ss:$56 sps:$4 sm:$0xff]   ;;  %v3722_v47 = vld [vmem:[#allocation5 + $0x16c] ss:$56 sps:$4 sm:$0xff]  }
  0x6b   :  { %790 = vmatprep.subr.bf16.mxu0 %v3674_v17  ;;  %833 = vmatprep.subr.bf16.mxu1 %v3676_v18  ;;  %v3719_v46 = vld [vmem:[#allocation5 + $0x164] ss:$56 sps:$4 sm:$0xff]   ;;  %v3717_v48 = vld [vmem:[#allocation5 + $0x160] ss:$56 sps:$4 sm:$0xff]   ;;  %v3725_v50 = vld [vmem:[#allocation5 + $0x1d4] ss:$56 sps:$4 sm:$0xff]  }
  0x6c   :  { %v3720_v49 = vld [vmem:[#allocation5 + $0x168] ss:$56 sps:$4 sm:$0xff]   ;;  %v3728_v51 = vld [vmem:[#allocation5 + $0x1dc] ss:$56 sps:$4 sm:$0xff]   ;;  %v3726_v53 = vld [vmem:[#allocation5 + $0x1d8] ss:$56 sps:$4 sm:$0xff]  }
  0x6d   :  { %v3723_v52 = vld [vmem:[#allocation5 + $0x1d0] ss:$56 sps:$4 sm:$0xff]   ;;  %v3731_v54 = vld [vmem:[#allocation5 + $0x244] ss:$56 sps:$4 sm:$0xff]   ;;  %v3729_v56 = vld [vmem:[#allocation5 + $0x240] ss:$56 sps:$4 sm:$0xff]  }
  0x6e   :  { %791 = vmatpush1.bf16.msra.mxu0 %v3678_v19  ;;  %834 = vmatpush1.bf16.msra.mxu1 %v3679_v20  ;;  %v3734_v55 = vld [vmem:[#allocation5 + $0x24c] ss:$56 sps:$4 sm:$0xff]   ;;  %v3732_v57 = vld [vmem:[#allocation5 + $0x248] ss:$56 sps:$4 sm:$0xff]   ;;  %v3740_v59 = vld [vmem:[#allocation5 + $0x2bc] ss:$56 sps:$4 sm:$0xff]  }
  0x6f   :  { %792 = vmatprep.subr.bf16.mxu0 %v3680_v21  ;;  %835 = vmatprep.subr.bf16.mxu1 %v3682_v22  ;;  %v3737_v58 = vld [vmem:[#allocation5 + $0x2b4] ss:$56 sps:$4 sm:$0xff]   ;;  %v3735_v60 = vld [vmem:[#allocation5 + $0x2b0] ss:$56 sps:$4 sm:$0xff]   ;;  %v3743_v62 = vld [vmem:[#allocation5 + $0x324] ss:$56 sps:$4 sm:$0xff]  }
  0x70   :  { %v3738_v61 = vld [vmem:[#allocation5 + $0x2b8] ss:$56 sps:$4 sm:$0xff]   ;;  %v3746_v63 = vld [vmem:[#allocation5 + $0x32c] ss:$56 sps:$4 sm:$0xff]   ;;  %v3744_v2 = vld [vmem:[#allocation5 + $0x328] ss:$56 sps:$4 sm:$0xff]  }
  0x71   :  { %v3741_v1 = vld [vmem:[#allocation5 + $0x320] ss:$56 sps:$4 sm:$0xff]   ;;  %v3749_v3 = vld [vmem:[#allocation5 + $0x24] ss:$56 sps:$4 sm:$0xff]   ;;  %v3755_v7 = vld [vmem:[#allocation5 + $0x94] ss:$56 sps:$4 sm:$0xff]  }
  0x72   :  { %793 = vmatpush1.bf16.msra.mxu0 %v3684_v23  ;;  %836 = vmatpush1.bf16.msra.mxu1 %v3685_v24  ;;  %v3752_v4 = vld [vmem:[#allocation5 + $0x2c] ss:$56 sps:$4 sm:$0xff]   ;;  %v3747_v5 = vld [vmem:[#allocation5 + $0x20] ss:$56 sps:$4 sm:$0xff]   ;;  %v3758_v8 = vld [vmem:[#allocation5 + $0x9c] ss:$56 sps:$4 sm:$0xff]  }
  0x73   :  { %794 = vmatprep.subr.bf16.mxu0 %v3686_v25  ;;  %837 = vmatprep.subr.bf16.mxu1 %v3688_v26  ;;  %v3750_v6 = vld [vmem:[#allocation5 + $0x28] ss:$56 sps:$4 sm:$0xff]   ;;  %v3756_v10 = vld [vmem:[#allocation5 + $0x98] ss:$56 sps:$4 sm:$0xff]   ;;  %v3761_v11 = vld [vmem:[#allocation5 + $0x104] ss:$56 sps:$4 sm:$0xff]  }
  0x74   :  { %v3753_v9 = vld [vmem:[#allocation5 + $0x90] ss:$56 sps:$4 sm:$0xff]   ;;  %v3764_v12 = vld [vmem:[#allocation5 + $0x10c] ss:$56 sps:$4 sm:$0xff]   ;;  %v3759_v13 = vld [vmem:[#allocation5 + $0x100] ss:$56 sps:$4 sm:$0xff]  }
  0x75   :  { %v3762_v14 = vld [vmem:[#allocation5 + $0x108] ss:$56 sps:$4 sm:$0xff]   ;;  %v3767_v15 = vld [vmem:[#allocation5 + $0x174] ss:$56 sps:$4 sm:$0xff]   ;;  %v3768_v18 = vld [vmem:[#allocation5 + $0x178] ss:$56 sps:$4 sm:$0xff]  }
  0x76   :  { %795 = vmatpush1.bf16.msra.mxu0 %v3690_v27  ;;  %838 = vmatpush1.bf16.msra.mxu1 %v3691_v28  ;;  %v3770_v16 = vld [vmem:[#allocation5 + $0x17c] ss:$56 sps:$4 sm:$0xff]   ;;  %v3765_v17 = vld [vmem:[#allocation5 + $0x170] ss:$56 sps:$4 sm:$0xff]   ;;  %v3776_v20 = vld [vmem:[#allocation5 + $0x1ec] ss:$56 sps:$4 sm:$0xff]  }
  0x77   :  { %796 = vmatprep.subr.bf16.mxu0 %v3692_v29  ;;  %839 = vmatprep.subr.bf16.mxu1 %v3694_v30  ;;  %v3773_v19 = vld [vmem:[#allocation5 + $0x1e4] ss:$56 sps:$4 sm:$0xff]   ;;  %v3771_v21 = vld [vmem:[#allocation5 + $0x1e0] ss:$56 sps:$4 sm:$0xff]   ;;  %v3779_v23 = vld [vmem:[#allocation5 + $0x254] ss:$56 sps:$4 sm:$0xff]  }
  0x78   :  { %v3774_v22 = vld [vmem:[#allocation5 + $0x1e8] ss:$56 sps:$4 sm:$0xff]   ;;  %v3782_v24 = vld [vmem:[#allocation5 + $0x25c] ss:$56 sps:$4 sm:$0xff]   ;;  %v3780_v26 = vld [vmem:[#allocation5 + $0x258] ss:$56 sps:$4 sm:$0xff]  }
  0x79   :  { %v3777_v25 = vld [vmem:[#allocation5 + $0x250] ss:$56 sps:$4 sm:$0xff]   ;;  %v3785_v27 = vld [vmem:[#allocation5 + $0x2c4] ss:$56 sps:$4 sm:$0xff]   ;;  %v3783_v29 = vld [vmem:[#allocation5 + $0x2c0] ss:$56 sps:$4 sm:$0xff]  }
  0x7a   :  { %797 = vmatpush1.bf16.msra.mxu0 %v3696_v31  ;;  %840 = vmatpush1.bf16.msra.mxu1 %v3697_v32  ;;  %v3788_v28 = vld [vmem:[#allocation5 + $0x2cc] ss:$56 sps:$4 sm:$0xff]   ;;  %v3786_v30 = vld [vmem:[#allocation5 + $0x2c8] ss:$56 sps:$4 sm:$0xff]   ;;  %v3794_v32 = vld [vmem:[#allocation5 + $0x33c] ss:$56 sps:$4 sm:$0xff]  }
  0x7b   :  { %868 = vmatprep.subr.bf16.mxu0 %v3701_v33  ;;  %911 = vmatprep.subr.bf16.mxu1 %v3704_v34  ;;  %v3791_v31 = vld [vmem:[#allocation5 + $0x334] ss:$56 sps:$4 sm:$0xff]   ;;  %v3789_v33 = vld [vmem:[#allocation5 + $0x330] ss:$56 sps:$4 sm:$0xff]   ;;  %s3181_s1 = sshll.u32 %s4373_s13, 4  ;;  %s3182_s1 = int_to_ptr.vmem [resolvable:$true] %s3181_s1 }
  0x7c   :  { %v3792_v34 = vld [vmem:[#allocation5 + $0x338] ss:$56 sps:$4 sm:$0xff]   ;;  %p4334_p13 = scmp.lt.s32.totalorder %s3182_s1, %s3182_s1 }
  0x7d   :  { %815 = vmatmul.mubr.bf16.vlgmr.msra.gmra.mrb[0].mxu0 %v4497_v35  ;;  %858 = vmatmul.mubr.bf16.vlgmr.msra.gmra.mrb[0].mxu1 %v4497_v35 }
  0x7e   :  { %869 = vmatpush1.bf16.msra.mxu0 %v3699_v36  ;;  %912 = vmatpush1.bf16.msra.mxu1 %v3702_v37  ;;  %v3797_v36 = vld [vmem:[#allocation5 + $0x34] ss:$56 sps:$4 sm:$0xff]   ;;  %v3795_v37 = vld [vmem:[#allocation5 + $0x30] ss:$56 sps:$4 sm:$0xff]  }
  0x7f   :  { %870 = vmatprep.subr.bf16.mxu0 %v3707_v38  ;;  %913 = vmatprep.subr.bf16.mxu1 %v3710_v39  ;;  %v3800_v38 = vld [vmem:[#allocation5 + $0xa4] ss:$56 sps:$4 sm:$0xff]   ;;  %v3798_v39 = vld [vmem:[#allocation5 + $0xa0] ss:$56 sps:$4 sm:$0xff]  }
  0x80   :  { %900 = vmatprep.mubr.bf16.mxu0 %v4370_v0  ;;  %943 = vmatprep.mubr.bf16.mxu1 %v4370_v0 }
  0x82   :  { %871 = vmatpush1.bf16.msra.mxu0 %v3705_v40  ;;  %914 = vmatpush1.bf16.msra.mxu1 %v3708_v41  ;;  %v3803_v40 = vld [vmem:[#allocation5 + $0x114] ss:$56 sps:$4 sm:$0xff]   ;;  %v3801_v41 = vld [vmem:[#allocation5 + $0x110] ss:$56 sps:$4 sm:$0xff]  }
  0x83   :  { %872 = vmatprep.subr.bf16.mxu0 %v3713_v42  ;;  %915 = vmatprep.subr.bf16.mxu1 %v3716_v43  ;;  %v3806_v42 = vld [vmem:[#allocation5 + $0x184] ss:$56 sps:$4 sm:$0xff]   ;;  %v3804_v43 = vld [vmem:[#allocation5 + $0x180] ss:$56 sps:$4 sm:$0xff]  }
  0x86   :  { %873 = vmatpush1.bf16.msra.mxu0 %v3711_v44  ;;  %916 = vmatpush1.bf16.msra.mxu1 %v3714_v45  ;;  %v3809_v44 = vld [vmem:[#allocation5 + $0x1f4] ss:$56 sps:$4 sm:$0xff]   ;;  %v3807_v45 = vld [vmem:[#allocation5 + $0x1f0] ss:$56 sps:$4 sm:$0xff]  }
  0x87   :  { %874 = vmatprep.subr.bf16.mxu0 %v3719_v46  ;;  %917 = vmatprep.subr.bf16.mxu1 %v3722_v47  ;;  %v3812_v46 = vld [vmem:[#allocation5 + $0x264] ss:$56 sps:$4 sm:$0xff]   ;;  %v3810_v47 = vld [vmem:[#allocation5 + $0x260] ss:$56 sps:$4 sm:$0xff]  }
  0x8a   :  { %875 = vmatpush1.bf16.msra.mxu0 %v3717_v48  ;;  %918 = vmatpush1.bf16.msra.mxu1 %v3720_v49  ;;  %v3815_v48 = vld [vmem:[#allocation5 + $0x2d4] ss:$56 sps:$4 sm:$0xff]   ;;  %v3813_v49 = vld [vmem:[#allocation5 + $0x2d0] ss:$56 sps:$4 sm:$0xff]  }
  0x8b   :  { %876 = vmatprep.subr.bf16.mxu0 %v3725_v50  ;;  %919 = vmatprep.subr.bf16.mxu1 %v3728_v51  ;;  %v3818_v50 = vld [vmem:[#allocation5 + $0x344] ss:$56 sps:$4 sm:$0xff]   ;;  %v3819_v51 = vld [vmem:[#allocation7] ss:$16 sps:$4 sm:$0xff]  }
  0x8e   :  { %877 = vmatpush1.bf16.msra.mxu0 %v3723_v52  ;;  %920 = vmatpush1.bf16.msra.mxu1 %v3726_v53  ;;  %v3821_v52 = vld [vmem:[#allocation7 + $0x4] ss:$16 sps:$4 sm:$0xff]  }
  0x8f   :  { %878 = vmatprep.subr.bf16.mxu0 %v3731_v54  ;;  %921 = vmatprep.subr.bf16.mxu1 %v3734_v55  ;;  %v3827_v53 = vld [vmem:[#allocation7 + $0x24] ss:$16 sps:$4 sm:$0xff]   ;;  %v3816_v54 = vld [vmem:[#allocation5 + $0x340] ss:$56 sps:$4 sm:$0xff]   ;;  %v3824_v55 = vld [vmem:[#allocation7 + $0xc] ss:$16 sps:$4 sm:$0xff]  }
  0x92   :  { %879 = vmatpush1.bf16.msra.mxu0 %v3729_v56  ;;  %922 = vmatpush1.bf16.msra.mxu1 %v3732_v57  ;;  %v3825_v56 = vld [vmem:[#allocation7 + $0x20] ss:$16 sps:$4 sm:$0xff]   ;;  %v3833_v57 = vld [vmem:[#allocation7 + $0x44] ss:$16 sps:$4 sm:$0xff]  }
  0x93   :  { %880 = vmatprep.subr.bf16.mxu0 %v3737_v58  ;;  %923 = vmatprep.subr.bf16.mxu1 %v3740_v59  ;;  %v3822_v58 = vld [vmem:[#allocation7 + $0x8] ss:$16 sps:$4 sm:$0xff]   ;;  %v3831_v59 = vld [vmem:[#allocation7 + $0x40] ss:$16 sps:$4 sm:$0xff]  }
  0x96   :  { %881 = vmatpush1.bf16.msra.mxu0 %v3735_v60  ;;  %924 = vmatpush1.bf16.msra.mxu1 %v3738_v61  ;;  %v3830_v60 = vld [vmem:[#allocation7 + $0x2c] ss:$16 sps:$4 sm:$0xff]   ;;  %v3828_v61 = vld [vmem:[#allocation7 + $0x28] ss:$16 sps:$4 sm:$0xff]  }
  0x97   :  { %882 = vmatprep.subr.bf16.mxu0 %v3743_v62  ;;  %925 = vmatprep.subr.bf16.mxu1 %v3746_v63  ;;  %v3836_v62 = vld [vmem:[#allocation7 + $0x4c] ss:$16 sps:$4 sm:$0xff]   ;;  %v3834_v63 = vld [vmem:[#allocation7 + $0x48] ss:$16 sps:$4 sm:$0xff]  }
  0x9a   :  { %883 = vmatpush1.bf16.msra.mxu0 %v3741_v1  ;;  %926 = vmatpush1.bf16.msra.mxu1 %v3744_v2  ;;  %v3839_v1 = vld [vmem:[#allocation7 + $0x64] ss:$16 sps:$4 sm:$0xff]   ;;  %v3842_v2 = vld [vmem:[#allocation7 + $0x6c] ss:$16 sps:$4 sm:$0xff]  }
  0x9b   :  { %954 = vmatprep.subr.bf16.mxu0 %v3749_v3  ;;  %997 = vmatprep.subr.bf16.mxu1 %v3752_v4  ;;  %v3837_v3 = vld [vmem:[#allocation7 + $0x60] ss:$16 sps:$4 sm:$0xff]   ;;  %v3840_v4 = vld [vmem:[#allocation7 + $0x68] ss:$16 sps:$4 sm:$0xff]  }
  0x9d   :  { %901 = vmatmul.mubr.bf16.vlgmr.msra.gmra.mrb[4].mxu0 %v4497_v35  ;;  %944 = vmatmul.mubr.bf16.vlgmr.msra.gmra.mrb[4].mxu1 %v4497_v35 }
  0x9e   :  { %955 = vmatpush1.bf16.msra.mxu0 %v3747_v5  ;;  %998 = vmatpush1.bf16.msra.mxu1 %v3750_v6  ;;  %v3845_v5 = vld [vmem:[#allocation7 + $0x84] ss:$16 sps:$4 sm:$0xff]   ;;  %v3848_v6 = vld [vmem:[#allocation7 + $0x8c] ss:$16 sps:$4 sm:$0xff]  }
  0x9f   :  { %956 = vmatprep.subr.bf16.mxu0 %v3755_v7  ;;  %999 = vmatprep.subr.bf16.mxu1 %v3758_v8  ;;  %v3843_v7 = vld [vmem:[#allocation7 + $0x80] ss:$16 sps:$4 sm:$0xff]   ;;  %v3851_v8 = vld [vmem:[#allocation7 + $0xa4] ss:$16 sps:$4 sm:$0xff]  }
  0xa0   :  { %986 = vmatprep.mubr.bf16.mxu0 %v4370_v0  ;;  %1029 = vmatprep.mubr.bf16.mxu1 %v4370_v0 }
  0xa2   :  { %957 = vmatpush1.bf16.msra.mxu0 %v3753_v9  ;;  %1000 = vmatpush1.bf16.msra.mxu1 %v3756_v10  ;;  %v3854_v9 = vld [vmem:[#allocation7 + $0xac] ss:$16 sps:$4 sm:$0xff]   ;;  %v3849_v10 = vld [vmem:[#allocation7 + $0xa0] ss:$16 sps:$4 sm:$0xff]  }
  0xa3   :  { %958 = vmatprep.subr.bf16.mxu0 %v3761_v11  ;;  %1001 = vmatprep.subr.bf16.mxu1 %v3764_v12  ;;  %v3852_v11 = vld [vmem:[#allocation7 + $0xa8] ss:$16 sps:$4 sm:$0xff]   ;;  %v3857_v12 = vld [vmem:[#allocation7 + $0xc4] ss:$16 sps:$4 sm:$0xff]  }
  0xa6   :  { %959 = vmatpush1.bf16.msra.mxu0 %v3759_v13  ;;  %1002 = vmatpush1.bf16.msra.mxu1 %v3762_v14  ;;  %v3855_v13 = vld [vmem:[#allocation7 + $0xc0] ss:$16 sps:$4 sm:$0xff]   ;;  %v3858_v14 = vld [vmem:[#allocation7 + $0xc8] ss:$16 sps:$4 sm:$0xff]  }
  0xa7   :  { %960 = vmatprep.subr.bf16.mxu0 %v3767_v15  ;;  %1003 = vmatprep.subr.bf16.mxu1 %v3770_v16  ;;  %v3860_v15 = vld [vmem:[#allocation7 + $0xcc] ss:$16 sps:$4 sm:$0xff]   ;;  %v3863_v16 = vld [vmem:[#allocation7 + $0xe4] ss:$16 sps:$4 sm:$0xff]  }
  0xaa   :  { %961 = vmatpush1.bf16.msra.mxu0 %v3765_v17  ;;  %1004 = vmatpush1.bf16.msra.mxu1 %v3768_v18  ;;  %v3866_v17 = vld [vmem:[#allocation7 + $0xec] ss:$16 sps:$4 sm:$0xff]   ;;  %v3861_v18 = vld [vmem:[#allocation7 + $0xe0] ss:$16 sps:$4 sm:$0xff]  }
  0xab   :  { %962 = vmatprep.subr.bf16.mxu0 %v3773_v19  ;;  %1005 = vmatprep.subr.bf16.mxu1 %v3776_v20  ;;  %v3864_v19 = vld [vmem:[#allocation7 + $0xe8] ss:$16 sps:$4 sm:$0xff]   ;;  %v3869_v20 = vld [vmem:[#allocation7 + $0x104] ss:$16 sps:$4 sm:$0xff]  }
  0xae   :  { %963 = vmatpush1.bf16.msra.mxu0 %v3771_v21  ;;  %1006 = vmatpush1.bf16.msra.mxu1 %v3774_v22  ;;  %v3872_v21 = vld [vmem:[#allocation7 + $0x10c] ss:$16 sps:$4 sm:$0xff]   ;;  %v3867_v22 = vld [vmem:[#allocation7 + $0x100] ss:$16 sps:$4 sm:$0xff]  }
  0xaf   :  { %964 = vmatprep.subr.bf16.mxu0 %v3779_v23  ;;  %1007 = vmatprep.subr.bf16.mxu1 %v3782_v24  ;;  %v3870_v23 = vld [vmem:[#allocation7 + $0x108] ss:$16 sps:$4 sm:$0xff]   ;;  %v3875_v24 = vld [vmem:[#allocation7 + $0x124] ss:$16 sps:$4 sm:$0xff]  }
  0xb2   :  { %965 = vmatpush1.bf16.msra.mxu0 %v3777_v25  ;;  %1008 = vmatpush1.bf16.msra.mxu1 %v3780_v26  ;;  %v3878_v25 = vld [vmem:[#allocation7 + $0x12c] ss:$16 sps:$4 sm:$0xff]   ;;  %v3873_v26 = vld [vmem:[#allocation7 + $0x120] ss:$16 sps:$4 sm:$0xff]  }
  0xb3   :  { %966 = vmatprep.subr.bf16.mxu0 %v3785_v27  ;;  %1009 = vmatprep.subr.bf16.mxu1 %v3788_v28  ;;  %v3876_v27 = vld [vmem:[#allocation7 + $0x128] ss:$16 sps:$4 sm:$0xff]   ;;  %v3881_v28 = vld [vmem:[#allocation7 + $0x144] ss:$16 sps:$4 sm:$0xff]  }
  0xb6   :  { %967 = vmatpush1.bf16.msra.mxu0 %v3783_v29  ;;  %1010 = vmatpush1.bf16.msra.mxu1 %v3786_v30  ;;  %v3884_v29 = vld [vmem:[#allocation7 + $0x14c] ss:$16 sps:$4 sm:$0xff]   ;;  %v3879_v30 = vld [vmem:[#allocation7 + $0x140] ss:$16 sps:$4 sm:$0xff]  }
  0xb7   :  { %968 = vmatprep.subr.bf16.mxu0 %v3791_v31  ;;  %1011 = vmatprep.subr.bf16.mxu1 %v3794_v32  ;;  %v3882_v31 = vld [vmem:[#allocation7 + $0x148] ss:$16 sps:$4 sm:$0xff]   ;;  %v3887_v32 = vld [vmem:[#allocation7 + $0x164] ss:$16 sps:$4 sm:$0xff]  }
  0xba   :  { %969 = vmatpush1.bf16.msra.mxu0 %v3789_v33  ;;  %1012 = vmatpush1.bf16.msra.mxu1 %v3792_v34  ;;  %v3890_v33 = vld [vmem:[#allocation7 + $0x16c] ss:$16 sps:$4 sm:$0xff]   ;;  %v3885_v34 = vld [vmem:[#allocation7 + $0x160] ss:$16 sps:$4 sm:$0xff]  }
  0xbb   :  { %1040 = vmatprep.subr.bf16.mxu0 %v3797_v36  ;;  %2513 = vmatprep.subr.bf16.mxu1 %v3821_v52  ;;  %v3888_v36 = vld [vmem:[#allocation7 + $0x168] ss:$16 sps:$4 sm:$0xff]  }
  0xbc   :  { %v3912_v52 = vld [vmem:[#allocation7 + $0x1e8] ss:$16 sps:$4 sm:$0xff]  }
  0xbd   :  { %987 = vmatmul.mubr.bf16.vlgmr.msra.gmra.mrb[8].mxu0 %v4497_v35  ;;  %1030 = vmatmul.mubr.bf16.vlgmr.msra.gmra.mrb[8].mxu1 %v4497_v35 }
  0xbe   :  { %1041 = vmatpush1.bf16.msra.mxu0 %v3795_v37  ;;  %1072 = vmatprep.mubr.bf16.mxu0 %v4370_v0  ;;  %v3893_v37 = vld [vmem:[#allocation7 + $0x184] ss:$16 sps:$4 sm:$0xff]  }
  0xbf   :  { %1042 = vmatprep.subr.bf16.mxu0 %v3800_v38  ;;  %2514 = vmatpush1.bf16.msra.mxu1 %v3819_v51  ;;  %v3896_v38 = vld [vmem:[#allocation7 + $0x18c] ss:$16 sps:$4 sm:$0xff]   ;;  %v3909_v51 = vld [vmem:[#allocation7 + $0x1e0] ss:$16 sps:$4 sm:$0xff]  }
  0xc0   :  { %2515 = vmatprep.subr.bf16.mxu1 %v3827_v53  ;;  %v3917_v53 = vld [vmem:[#allocation7 + $0x204] ss:$16 sps:$4 sm:$0xff]  }
  0xc2   :  { %1043 = vmatpush1.bf16.msra.mxu0 %v3798_v39  ;;  %v3891_v39 = vld [vmem:[#allocation7 + $0x180] ss:$16 sps:$4 sm:$0xff]  }
  0xc3   :  { %1044 = vmatprep.subr.bf16.mxu0 %v3803_v40  ;;  %2516 = vmatpush1.bf16.msra.mxu1 %v3825_v56  ;;  %v3894_v40 = vld [vmem:[#allocation7 + $0x188] ss:$16 sps:$4 sm:$0xff]  }
  0xc4   :  { %2517 = vmatprep.subr.bf16.mxu1 %v3833_v57 }
  0xc6   :  { %1045 = vmatpush1.bf16.msra.mxu0 %v3801_v41  ;;  %v3899_v41 = vld [vmem:[#allocation7 + $0x1a4] ss:$16 sps:$4 sm:$0xff]  }
  0xc7   :  { %1046 = vmatprep.subr.bf16.mxu0 %v3806_v42  ;;  %2518 = vmatpush1.bf16.msra.mxu1 %v3831_v59  ;;  %v3902_v42 = vld [vmem:[#allocation7 + $0x1ac] ss:$16 sps:$4 sm:$0xff]  }
  0xc8   :  { %2519 = vmatprep.subr.bf16.mxu1 %v3839_v1 }
  0xca   :  { %1047 = vmatpush1.bf16.msra.mxu0 %v3804_v43  ;;  %v3897_v43 = vld [vmem:[#allocation7 + $0x1a0] ss:$16 sps:$4 sm:$0xff]  }
  0xcb   :  { %1048 = vmatprep.subr.bf16.mxu0 %v3809_v44  ;;  %2520 = vmatpush1.bf16.msra.mxu1 %v3837_v3  ;;  %v3900_v44 = vld [vmem:[#allocation7 + $0x1a8] ss:$16 sps:$4 sm:$0xff]  }
  0xcc   :  { %2521 = vmatprep.subr.bf16.mxu1 %v3845_v5  ;;  %v4517_v3 = vld [vmem:[%s4593_s2] sm:$0xff] }
  0xce   :  { %1049 = vmatpush1.bf16.msra.mxu0 %v3807_v45  ;;  %v3905_v45 = vld [vmem:[#allocation7 + $0x1c4] ss:$16 sps:$4 sm:$0xff]  }
  0xcf   :  { %1050 = vmatprep.subr.bf16.mxu0 %v3812_v46  ;;  %2522 = vmatpush1.bf16.msra.mxu1 %v3843_v7  ;;  %v3903_v46 = vld [vmem:[#allocation7 + $0x1c0] ss:$16 sps:$4 sm:$0xff]  }
  0xd0   :  { %2523 = vmatprep.subr.bf16.mxu1 %v3851_v8 }
  0xd2   :  { %1051 = vmatpush1.bf16.msra.mxu0 %v3810_v47  ;;  %v3906_v47 = vld [vmem:[#allocation7 + $0x1c8] ss:$16 sps:$4 sm:$0xff]  }
  0xd3   :  { %1052 = vmatprep.subr.bf16.mxu0 %v3815_v48  ;;  %2524 = vmatpush1.bf16.msra.mxu1 %v3849_v10  ;;  %v3908_v48 = vld [vmem:[#allocation7 + $0x1cc] ss:$16 sps:$4 sm:$0xff]  }
  0xd4   :  { %2525 = vmatprep.subr.bf16.mxu1 %v3857_v12 }
  0xd6   :  { %1053 = vmatpush1.bf16.msra.mxu0 %v3813_v49  ;;  %v3911_v49 = vld [vmem:[#allocation7 + $0x1e4] ss:$16 sps:$4 sm:$0xff]  }
  0xd7   :  { %1054 = vmatprep.subr.bf16.mxu0 %v3818_v50  ;;  %2526 = vmatpush1.bf16.msra.mxu1 %v3855_v13  ;;  %v3914_v50 = vld [vmem:[#allocation7 + $0x1ec] ss:$16 sps:$4 sm:$0xff]  }
  0xd8   :  { %2527 = vmatprep.subr.bf16.mxu1 %v3863_v16 }
  0xda   :  { %1055 = vmatpush1.bf16.msra.mxu0 %v3816_v54  ;;  %v3920_v54 = vld [vmem:[#allocation7 + $0x20c] ss:$16 sps:$4 sm:$0xff]  }
  0xdb   :  { %2685 = vmatprep.subr.bf16.mxu0 %v3824_v55  ;;  %2528 = vmatpush1.bf16.msra.mxu1 %v3861_v18 }
  0xdc   :  { %2529 = vmatprep.subr.bf16.mxu1 %v3869_v20 }
  0xdd   :  { %1073 = vmatmul.mubr.bf16.vlgmr.msra.gmra.mrb[12].mxu0 %v4497_v35  ;;  %v3846_v35 = vld [vmem:[#allocation7 + $0x88] ss:$16 sps:$4 sm:$0xff]  }
  0xde   :  { %2686 = vmatpush1.bf16.msra.mxu0 %v3822_v58 }
  0xdf   :  { %2687 = vmatprep.subr.bf16.mxu0 %v3830_v60  ;;  %2530 = vmatpush1.bf16.msra.mxu1 %v3867_v22 }
  0xe0   :  { %2531 = vmatprep.subr.bf16.mxu1 %v3875_v24 }
  0xe2   :  { %2688 = vmatpush1.bf16.msra.mxu0 %v3828_v61 }
  0xe3   :  { %2689 = vmatprep.subr.bf16.mxu0 %v3836_v62  ;;  %2532 = vmatpush1.bf16.msra.mxu1 %v3873_v26 }
  0xe4   :  { %2533 = vmatprep.subr.bf16.mxu1 %v3881_v28 }
  0xe6   :  { %2690 = vmatpush1.bf16.msra.mxu0 %v3834_v63  ;;  %v1099_v63 = vlaneseq }
  0xe7   :  { %2691 = vmatprep.subr.bf16.mxu0 %v3842_v2  ;;  %2534 = vmatpush1.bf16.msra.mxu1 %v3879_v30 }
  0xe8   :  { %2535 = vmatprep.subr.bf16.mxu1 %v3887_v32  ;;  %v4511_v1 = vshrl.u32 %v1099_v63, 7 }
  0xea   :  { %2692 = vmatpush1.bf16.msra.mxu0 %v3840_v4  ;;  %v1101_v2 = vsub.s32 0, %v4511_v1  ;;  %v1113_v20 = vsub.s32 3, %v4511_v1  ;;  %v1117_v22 = vsub.s32 4, %v4511_v1 }
  0xeb   :  { %2693 = vmatprep.subr.bf16.mxu0 %v3848_v6  ;;  %2536 = vmatpush1.bf16.msra.mxu1 %v3885_v34 }
  0xec   :  { %2537 = vmatprep.subr.bf16.mxu1 %v3893_v37  ;;  %v1102_v6 = vrot.slane %v4517_v3, %v1101_v2  ;;  %v1114_v24 = vrot.slane %v4517_v3, %v1113_v20  ;;  %v1118_v28 = vrot.slane %v4517_v3, %v1117_v22  ;;  %v3935_v20 = vld [vmem:[#allocation7 + $0x264] ss:$16 sps:$4 sm:$0xff]  }
  0xee   :  { %2694 = vmatpush1.bf16.msra.mxu0 %v3846_v35 }
  0xef   :  { %2695 = vmatprep.subr.bf16.mxu0 %v3854_v9  ;;  %2538 = vmatpush1.bf16.msra.mxu1 %v3891_v39 }
  0xf0   :  { %2539 = vmatprep.subr.bf16.mxu1 %v3899_v41 }
  0xf2   :  { %2696 = vmatpush1.bf16.msra.mxu0 %v3852_v11 }
  0xf3   :  { %2697 = vmatprep.subr.bf16.mxu0 %v3860_v15  ;;  %2540 = vmatpush1.bf16.msra.mxu1 %v3897_v43 }
  0xf4   :  { %2541 = vmatprep.subr.bf16.mxu1 %v3905_v45 }
  0xf6   :  { %2698 = vmatpush1.bf16.msra.mxu0 %v3858_v14 }
  0xf7   :  { %2699 = vmatprep.subr.bf16.mxu0 %v3866_v17  ;;  %2542 = vmatpush1.bf16.msra.mxu1 %v3903_v46 }
  0xf8   :  { %2543 = vmatprep.subr.bf16.mxu1 %v3911_v49 }
  0xfa   :  { %2700 = vmatpush1.bf16.msra.mxu0 %v3864_v19  ;;  %v1105_v19 = vsub.s32 1, %v4511_v1 }
  0xfb   :  { %2701 = vmatprep.subr.bf16.mxu0 %v3872_v21  ;;  %2544 = vmatpush1.bf16.msra.mxu1 %v3909_v51  ;;  %v1109_v21 = vsub.s32 2, %v4511_v1 }
  0xfc   :  { %2556 = vmatprep.subr.bf16.mxu1 %v3917_v53 }
  0xfe   :  { %2702 = vmatpush1.bf16.msra.mxu0 %v3870_v23  ;;  %v1106_v23 = vrot.slane %v4517_v3, %v1105_v19 }
  0xff   :  { %2703 = vmatprep.subr.bf16.mxu0 %v3878_v25 }
 0x102   :  { %2704 = vmatpush1.bf16.msra.mxu0 %v3876_v27  ;;  %v1110_v27 = vrot.slane %v4517_v3, %v1109_v21  ;;  %v3938_v21 = vld [vmem:[#allocation7 + $0x26c] ss:$16 sps:$4 sm:$0xff]  }
 0x103   :  { %2705 = vmatprep.subr.bf16.mxu0 %v3884_v29 }
 0x106   :  { %2706 = vmatpush1.bf16.msra.mxu0 %v3882_v31 }
 0x107   :  { %2707 = vmatprep.subr.bf16.mxu0 %v3890_v33 }
 0x10a   :  { %2708 = vmatpush1.bf16.msra.mxu0 %v3888_v36 }
 0x10b   :  { %2709 = vmatprep.subr.bf16.mxu0 %v3896_v38 }
 0x10e   :  { %2710 = vmatpush1.bf16.msra.mxu0 %v3894_v40 }
 0x10f   :  { %2711 = vmatprep.subr.bf16.mxu0 %v3902_v42 }
 0x112   :  { %2712 = vmatpush1.bf16.msra.mxu0 %v3900_v44 }
 0x113   :  { %2713 = vmatprep.subr.bf16.mxu0 %v3908_v48 }
 0x116   :  { %2714 = vmatpush1.bf16.msra.mxu0 %v3906_v47 }
 0x117   :  { %2715 = vmatprep.subr.bf16.mxu0 %v3914_v50 }
 0x11a   :  { %2716 = vmatpush1.bf16.msra.mxu0 %v3912_v52 }
 0x11b   :  { %2728 = vmatprep.subr.bf16.mxu0 %v3920_v54 }
 0x150   :  { %v816_v55 = vpop.f32.mrb[0].mxu0  ;;  %v859_v56 = vpop.f32.mrb[0].mxu1 }
 0x151   :  { %v818_v57 = vpop.f32.mrb[1].mxu0  ;;  %v861_v58 = vpop.f32.mrb[1].mxu1 }
 0x152   :  { %v820_v59 = vpop.f32.mrb[2].mxu0  ;;  %v863_v60 = vpop.f32.mrb[2].mxu1 }
 0x153   :  { %v822_v61 = vpop.f32.mrb[3].mxu0  ;;  %v865_v62 = vpop.f32.mrb[3].mxu1 }
 0x170   :  { %v902_v4 = vpop.f32.mrb[4].mxu0  ;;  %v4519_v5 = vpop.f32.mrb[4].mxu1 }
 0x171   :  { %v4524_v7 = vpop.f32.mrb[5].mxu0  ;;  %v947_v35 = vpop.f32.mrb[5].mxu1 }
 0x172   :  { %v1083_v8 = vmax.f32 %v816_v55, %v947_v35  ;;  %v906_v9 = vpop.f32.mrb[6].mxu0  ;;  %v4526_v10 = vpop.f32.mrb[6].mxu1 }
 0x173   :  { %v4528_v11 = vpop.f32.mrb[7].mxu0  ;;  %v951_v12 = vpop.f32.mrb[7].mxu1 }
 0x174   :  { %v1134_v13 = vadd.f32 %v1102_v6, %v1083_v8  ;;  %v1090_v14 = vmax.f32 %v820_v59, %v951_v12  ;;  %v3915_v59 = vld [vmem:[#allocation7 + $0x200] ss:$16 sps:$4 sm:$0xff]   ;;  %v3924_v12 = vld [vmem:[#allocation7 + $0x228] ss:$16 sps:$4 sm:$0xff]  }
 0x176   :  { %v1141_v15 = vadd.f32 %v1102_v6, %v1090_v14  ;;  %4179 = vtanh.f32 %v1134_v13  ;;  %v3926_v6 = vld [vmem:[#allocation7 + $0x22c] ss:$16 sps:$4 sm:$0xff]   ;;  %v3929_v13 = vld [vmem:[#allocation7 + $0x244] ss:$16 sps:$4 sm:$0xff]  }
 0x177   :  { %v3932_v14 = vld [vmem:[#allocation7 + $0x24c] ss:$16 sps:$4 sm:$0xff]  }
 0x178   :  { %4181 = vtanh.f32 %v1141_v15  ;;  %v1121_v15 = vsub.s32 5, %v4511_v1 }
 0x17a   :  { %v1122_v22 = vrot.slane %v4517_v3, %v1121_v15  ;;  %v3981_v15 = vld [vmem:[#allocation7 + $0x360] ss:$16 sps:$4 sm:$0xff]  }
 0x180   :  { %v4180_v16 = vpop.eup %4179 }
 0x182   :  { %v4182_v17 = vpop.eup %4181 }
 0x183   :  { %v1162_v18 = vpack.c.bf16 %v4182_v17, %v4180_v16  ;;  %v3927_v16 = vld [vmem:[#allocation7 + $0x240] ss:$16 sps:$4 sm:$0xff]   ;;  %v3930_v17 = vld [vmem:[#allocation7 + $0x248] ss:$16 sps:$4 sm:$0xff]  }
 0x190   :  { %v988_v25 = vpop.f32.mrb[8].mxu0  ;;  %v1031_v26 = vpop.f32.mrb[8].mxu1 }
 0x191   :  { %v1084_v29 = vmax.f32 %v818_v57, %v988_v25  ;;  %v1086_v30 = vmax.f32 %v861_v58, %v1031_v26  ;;  %v990_v31 = vpop.f32.mrb[9].mxu0  ;;  %v1033_v32 = vpop.f32.mrb[9].mxu1  ;;  %v3936_v25 = vld [vmem:[#allocation7 + $0x268] ss:$16 sps:$4 sm:$0xff]  }
 0x192   :  { %v1085_v33 = vmax.f32 %v859_v56, %v990_v31  ;;  %v1087_v34 = vmax.f32 %v902_v4, %v1033_v32  ;;  %v992_v36 = vpop.f32.mrb[10].mxu0  ;;  %v1035_v37 = vpop.f32.mrb[10].mxu1  ;;  %v3923_v4 = vld [vmem:[#allocation7 + $0x224] ss:$16 sps:$4 sm:$0xff]  }
 0x193   :  { %v1135_v38 = vadd.f32 %v1106_v23, %v1084_v29  ;;  %v1137_v39 = vadd.f32 %v1114_v24, %v1086_v30  ;;  %v1091_v40 = vmax.f32 %v822_v61, %v992_v36  ;;  %v1093_v41 = vmax.f32 %v865_v62, %v1035_v37  ;;  %v994_v42 = vpop.f32.mrb[11].mxu0  ;;  %v1037_v43 = vpop.f32.mrb[11].mxu1  ;;  %v3941_v29 = vld [vmem:[#allocation7 + $0x284] ss:$16 sps:$4 sm:$0xff]   ;;  %v3944_v30 = vld [vmem:[#allocation7 + $0x28c] ss:$16 sps:$4 sm:$0xff]  }
 0x194   :  { %v1136_v44 = vadd.f32 %v1110_v27, %v1085_v33  ;;  %v1138_v45 = vadd.f32 %v1118_v28, %v1087_v34  ;;  %v1092_v46 = vmax.f32 %v863_v60, %v994_v42  ;;  %v1094_v47 = vmax.f32 %v906_v9, %v1037_v43  ;;  %v3918_v60 = vld [vmem:[#allocation7 + $0x208] ss:$16 sps:$4 sm:$0xff]   ;;  %v3921_v9 = vld [vmem:[#allocation7 + $0x220] ss:$16 sps:$4 sm:$0xff]   ;;  %v3953_v43 = vld [vmem:[#allocation7 + $0x2c4] ss:$16 sps:$4 sm:$0xff]  }
 0x195   :  { %4183 = vtanh.f32 %v1135_v38  ;;  %v1142_v48 = vadd.f32 %v1106_v23, %v1091_v40  ;;  %v1144_v49 = vadd.f32 %v1114_v24, %v1093_v41  ;;  %v3933_v24 = vld [vmem:[#allocation7 + $0x260] ss:$16 sps:$4 sm:$0xff]   ;;  %v3947_v40 = vld [vmem:[#allocation7 + $0x2a4] ss:$16 sps:$4 sm:$0xff]   ;;  %v3950_v41 = vld [vmem:[#allocation7 + $0x2ac] ss:$16 sps:$4 sm:$0xff]  }
 0x196   :  { %4185 = vtanh.f32 %v1137_v39  ;;  %v1143_v50 = vadd.f32 %v1110_v27, %v1092_v46  ;;  %v1145_v51 = vadd.f32 %v1118_v28, %v1094_v47  ;;  %v3942_v39 = vld [vmem:[#allocation7 + $0x288] ss:$16 sps:$4 sm:$0xff]   ;;  %v3959_v46 = vld [vmem:[#allocation7 + $0x2e4] ss:$16 sps:$4 sm:$0xff]   ;;  %v3962_v47 = vld [vmem:[#allocation7 + $0x2ec] ss:$16 sps:$4 sm:$0xff]  }
 0x197   :  { %4187 = vtanh.f32 %v1136_v44  ;;  %v3948_v42 = vld [vmem:[#allocation7 + $0x2a8] ss:$16 sps:$4 sm:$0xff]   ;;  %v3951_v44 = vld [vmem:[#allocation7 + $0x2c0] ss:$16 sps:$4 sm:$0xff]  }
 0x198   :  { %4189 = vtanh.f32 %v1138_v45  ;;  %v3954_v45 = vld [vmem:[#allocation7 + $0x2c8] ss:$16 sps:$4 sm:$0xff]  }
 0x199   :  { %4191 = vtanh.f32 %v1142_v48 }
 0x19a   :  { %4193 = vtanh.f32 %v1144_v49 }
 0x19b   :  { %4195 = vtanh.f32 %v1143_v50  ;;  %v3957_v50 = vld [vmem:[#allocation7 + $0x2e0] ss:$16 sps:$4 sm:$0xff]  }
 0x19c   :  { %4197 = vtanh.f32 %v1145_v51  ;;  %v3960_v51 = vld [vmem:[#allocation7 + $0x2e8] ss:$16 sps:$4 sm:$0xff]  }
 0x19f   :  { %v4184_v52 = vpop.eup %4183 }
 0x1a0   :  { %v4186_v53 = vpop.eup %4185 }
 0x1a1   :  { %v4188_v54 = vpop.eup %4187 }
 0x1a2   :  { %v4190_v55 = vpop.eup %4189 }
 0x1a3   :  { %v4192_v56 = vpop.eup %4191 }
 0x1a4   :  { %v4194_v57 = vpop.eup %4193  ;;  %v1163_v58 = vpack.c.bf16 %v4192_v56, %v4184_v52 }
 0x1a5   :  { %v4196_v61 = vpop.eup %4195  ;;  %v1165_v62 = vpack.c.bf16 %v4194_v57, %v4186_v53  ;;  %v3965_v53 = vld [vmem:[#allocation7 + $0x304] ss:$16 sps:$4 sm:$0xff]  }
 0x1a6   :  { %v4198_v63 = vpop.eup %4197  ;;  %2545 = vmatprep.mubr.bf16.mxu1 %v1163_v58  ;;  %2717 = vmatprep.mubr.bf16.mxu0 %v1163_v58  ;;  %v4540_v35 = vpack.c.bf16 %v4196_v61, %v4188_v54  ;;  %v3968_v54 = vld [vmem:[#allocation7 + $0x30c] ss:$16 sps:$4 sm:$0xff]   ;;  %v3963_v58 = vld [vmem:[#allocation7 + $0x300] ss:$16 sps:$4 sm:$0xff]  }
 0x1a7   :  { %2546 = vmatmul.mubr.bf16.vlgmr.msra.gmra.mrb[12].mxu1 %v1162_v18  ;;  %2718 = vmatmul.mubr.bf16.vlgmr.msra.gmra.mrb[16].mxu0 %v1162_v18  ;;  %v4542_v8 = vpack.c.bf16 %v4198_v63, %v4190_v55  ;;  %v1125_v18 = vsub.s32 6, %v4511_v1  ;;  %v3974_v61 = vld [vmem:[#allocation7 + $0x32c] ss:$16 sps:$4 sm:$0xff]   ;;  %v3972_v63 = vld [vmem:[#allocation7 + $0x328] ss:$16 sps:$4 sm:$0xff]  }
 0x1a8   :  { %2557 = vmatpush1.bf16.msra.mxu1 %v3915_v59  ;;  %2729 = vmatpush1.bf16.msra.mxu0 %v3918_v60  ;;  %v3966_v59 = vld [vmem:[#allocation7 + $0x308] ss:$16 sps:$4 sm:$0xff]   ;;  %v3971_v60 = vld [vmem:[#allocation7 + $0x324] ss:$16 sps:$4 sm:$0xff]  }
 0x1a9   :  { %2588 = vmatprep.mubr.bf16.mxu1 %v1165_v62  ;;  %2760 = vmatprep.mubr.bf16.mxu0 %v1165_v62  ;;  %v1126_v26 = vrot.slane %v4517_v3, %v1125_v18  ;;  %v3939_v3 = vld [vmem:[#allocation7 + $0x280] ss:$16 sps:$4 sm:$0xff]   ;;  %v3992_v18 = vld [vmem:[#allocation7 + $0x38c] ss:$16 sps:$4 sm:$0xff]  }
 0x1aa   :  { %2558 = vmatprep.subr.bf16.mxu1 %v3923_v4  ;;  %2730 = vmatprep.subr.bf16.mxu0 %v3926_v6  ;;  %v3969_v62 = vld [vmem:[#allocation7 + $0x320] ss:$16 sps:$4 sm:$0xff]   ;;  %v3977_v4 = vld [vmem:[#allocation7 + $0x344] ss:$16 sps:$4 sm:$0xff]   ;;  %v3980_v6 = vld [vmem:[#allocation7 + $0x34c] ss:$16 sps:$4 sm:$0xff]  }
 0x1ac   :  { %2559 = vmatpush1.bf16.msra.mxu1 %v3921_v9  ;;  %2731 = vmatpush1.bf16.msra.mxu0 %v3924_v12  ;;  %v3975_v9 = vld [vmem:[#allocation7 + $0x340] ss:$16 sps:$4 sm:$0xff]   ;;  %v3978_v12 = vld [vmem:[#allocation7 + $0x348] ss:$16 sps:$4 sm:$0xff]  }
 0x1ad   :  { %2560 = vmatprep.subr.bf16.mxu1 %v3929_v13  ;;  %2732 = vmatprep.subr.bf16.mxu0 %v3932_v14  ;;  %v3983_v13 = vld [vmem:[#allocation7 + $0x364] ss:$16 sps:$4 sm:$0xff]   ;;  %v3986_v14 = vld [vmem:[#allocation7 + $0x36c] ss:$16 sps:$4 sm:$0xff]  }
 0x1b0   :  { %2561 = vmatpush1.bf16.msra.mxu1 %v3927_v16  ;;  %2733 = vmatpush1.bf16.msra.mxu0 %v3930_v17  ;;  %v1074_v23 = vpop.f32.mrb[12].mxu0  ;;  %v3984_v16 = vld [vmem:[#allocation7 + $0x368] ss:$16 sps:$4 sm:$0xff]   ;;  %v3989_v17 = vld [vmem:[#allocation7 + $0x384] ss:$16 sps:$4 sm:$0xff]  }
 0x1b1   :  { %v1088_v27 = vmax.f32 %v4524_v7, %v1074_v23  ;;  %2562 = vmatprep.subr.bf16.mxu1 %v3935_v20  ;;  %2734 = vmatprep.subr.bf16.mxu0 %v3938_v21  ;;  %v1076_v28 = vpop.f32.mrb[13].mxu0  ;;  %v3987_v20 = vld [vmem:[#allocation7 + $0x380] ss:$16 sps:$4 sm:$0xff]   ;;  %v3990_v21 = vld [vmem:[#allocation7 + $0x388] ss:$16 sps:$4 sm:$0xff]  }
 0x1b2   :  { %v1089_v31 = vmax.f32 %v4519_v5, %v1076_v28  ;;  %v1078_v32 = vpop.f32.mrb[14].mxu0  ;;  %v3998_v23 = vld [vmem:[#allocation7 + $0x3ac] ss:$16 sps:$4 sm:$0xff]   ;;  %v3999_v28 = vld [vmem:[#allocation7 + $0x3c0] ss:$16 sps:$4 sm:$0xff]  }
 0x1b3   :  { %v1139_v33 = vadd.f32 %v1122_v22, %v1088_v27  ;;  %v1095_v34 = vmax.f32 %v4528_v11, %v1078_v32  ;;  %v1080_v36 = vpop.f32.mrb[15].mxu0  ;;  %v3945_v11 = vld [vmem:[#allocation7 + $0x2a0] ss:$16 sps:$4 sm:$0xff]   ;;  %v4004_v27 = vld [vmem:[#allocation7 + $0x3cc] ss:$16 sps:$4 sm:$0xff]  }
 0x1b4   :  { %v1140_v37 = vadd.f32 %v1126_v26, %v1089_v31  ;;  %2563 = vmatpush1.bf16.msra.mxu1 %v3933_v24  ;;  %2735 = vmatpush1.bf16.msra.mxu0 %v3936_v25  ;;  %v1096_v38 = vmax.f32 %v4526_v10, %v1080_v36  ;;  %v3956_v10 = vld [vmem:[#allocation7 + $0x2cc] ss:$16 sps:$4 sm:$0xff]   ;;  %v3993_v24 = vld [vmem:[#allocation7 + $0x3a0] ss:$16 sps:$4 sm:$0xff]   ;;  %v3996_v25 = vld [vmem:[#allocation7 + $0x3a8] ss:$16 sps:$4 sm:$0xff]  }
 0x1b5   :  { %4199 = vtanh.f32 %v1139_v33  ;;  %v1146_v7 = vadd.f32 %v1122_v22, %v1095_v34  ;;  %2564 = vmatprep.subr.bf16.mxu1 %v3941_v29  ;;  %2736 = vmatprep.subr.bf16.mxu0 %v3944_v30  ;;  %v3995_v22 = vld [vmem:[#allocation7 + $0x3a4] ss:$16 sps:$4 sm:$0xff]   ;;  %v4002_v29 = vld [vmem:[#allocation7 + $0x3c8] ss:$16 sps:$4 sm:$0xff]   ;;  %v4010_v31 = vld [vmem:[#allocation7 + $0x3ec] ss:$16 sps:$4 sm:$0xff]  }
 0x1b6   :  { %4201 = vtanh.f32 %v1140_v37  ;;  %v1147_v5 = vadd.f32 %v1126_v26, %v1096_v38  ;;  %v4001_v26 = vld [vmem:[#allocation7 + $0x3c4] ss:$16 sps:$4 sm:$0xff]   ;;  %v4005_v32 = vld [vmem:[#allocation7 + $0x3e0] ss:$16 sps:$4 sm:$0xff]   ;;  %v4008_v33 = vld [vmem:[#allocation7 + $0x3e8] ss:$16 sps:$4 sm:$0xff]  }
 0x1b7   :  { %4203 = vtanh.f32 %v1146_v7  ;;  %v4007_v30 = vld [vmem:[#allocation7 + $0x3e4] ss:$16 sps:$4 sm:$0xff]   ;;  %v4016_v36 = vld [vmem:[#allocation7 + $0x40c] ss:$16 sps:$4 sm:$0xff]   ;;  %v4011_v37 = vld [vmem:[#allocation7 + $0x400] ss:$16 sps:$4 sm:$0xff]  }
 0x1b8   :  { %4205 = vtanh.f32 %v1147_v5  ;;  %2565 = vmatpush1.bf16.msra.mxu1 %v3939_v3  ;;  %2737 = vmatpush1.bf16.msra.mxu0 %v3942_v39  ;;  %v4013_v34 = vld [vmem:[#allocation7 + $0x404] ss:$16 sps:$4 sm:$0xff]   ;;  %v4014_v38 = vld [vmem:[#allocation7 + $0x408] ss:$16 sps:$4 sm:$0xff]   ;;  %v4022_v39 = vld [vmem:[#allocation7 + $0x42c] ss:$16 sps:$4 sm:$0xff]  }
 0x1b9   :  { %2566 = vmatprep.subr.bf16.mxu1 %v3947_v40  ;;  %2738 = vmatprep.subr.bf16.mxu0 %v3950_v41  ;;  %v4019_v3 = vld [vmem:[#allocation7 + $0x424] ss:$16 sps:$4 sm:$0xff]   ;;  %v4017_v7 = vld [vmem:[#allocation7 + $0x420] ss:$16 sps:$4 sm:$0xff]   ;;  %v4020_v40 = vld [vmem:[#allocation7 + $0x428] ss:$16 sps:$4 sm:$0xff]  }
 0x1ba   :  { %v4025_v41 = vld [vmem:[#allocation7 + $0x444] ss:$16 sps:$4 sm:$0xff]   ;;  %v4028_v5 = vld [vmem:[#allocation7 + $0x44c] ss:$16 sps:$4 sm:$0xff]  }
 0x1bc   :  { %2567 = vmatpush1.bf16.msra.mxu1 %v3945_v11  ;;  %2739 = vmatpush1.bf16.msra.mxu0 %v3948_v42  ;;  %v4023_v11 = vld [vmem:[#allocation7 + $0x440] ss:$16 sps:$4 sm:$0xff]   ;;  %v4026_v42 = vld [vmem:[#allocation7 + $0x448] ss:$16 sps:$4 sm:$0xff]  }
 0x1bd   :  { %2568 = vmatprep.subr.bf16.mxu1 %v3953_v43  ;;  %2740 = vmatprep.subr.bf16.mxu0 %v3956_v10  ;;  %v4031_v43 = vld [vmem:[#allocation7 + $0x464] ss:$16 sps:$4 sm:$0xff]   ;;  %v4029_v10 = vld [vmem:[#allocation7 + $0x460] ss:$16 sps:$4 sm:$0xff]  }
 0x1bf   :  { %v4200_v48 = vpop.eup %4199 }
 0x1c0   :  { %v4202_v49 = vpop.eup %4201  ;;  %2569 = vmatpush1.bf16.msra.mxu1 %v3951_v44  ;;  %2741 = vmatpush1.bf16.msra.mxu0 %v3954_v45  ;;  %v4032_v44 = vld [vmem:[#allocation7 + $0x468] ss:$16 sps:$4 sm:$0xff]   ;;  %v4037_v45 = vld [vmem:[#allocation7 + $0x484] ss:$16 sps:$4 sm:$0xff]  }
 0x1c1   :  { %v4204_v52 = vpop.eup %4203  ;;  %2570 = vmatprep.subr.bf16.mxu1 %v3959_v46  ;;  %2742 = vmatprep.subr.bf16.mxu0 %v3962_v47  ;;  %v4040_v46 = vld [vmem:[#allocation7 + $0x48c] ss:$16 sps:$4 sm:$0xff]   ;;  %v4035_v47 = vld [vmem:[#allocation7 + $0x480] ss:$16 sps:$4 sm:$0xff]  }
 0x1c2   :  { %v4206_v55 = vpop.eup %4205  ;;  %v4552_v56 = vpack.c.bf16 %v4204_v52, %v4200_v48  ;;  %v4038_v48 = vld [vmem:[#allocation7 + $0x488] ss:$16 sps:$4 sm:$0xff]  }
 0x1c3   :  { %v4554_v57 = vpack.c.bf16 %v4206_v55, %v4202_v49  ;;  %v4043_v49 = vld [vmem:[#allocation7 + $0x4a4] ss:$16 sps:$4 sm:$0xff]   ;;  %v4044_v52 = vld [vmem:[#allocation7 + $0x4a8] ss:$16 sps:$4 sm:$0xff]   ;;  %v4047_v55 = vld [vmem:[#allocation7 + $0x4c0] ss:$16 sps:$4 sm:$0xff]  }
 0x1c4   :  { %2571 = vmatpush1.bf16.msra.mxu1 %v3957_v50  ;;  %2743 = vmatpush1.bf16.msra.mxu0 %v3960_v51  ;;  %v4046_v50 = vld [vmem:[#allocation7 + $0x4ac] ss:$16 sps:$4 sm:$0xff]   ;;  %v4041_v51 = vld [vmem:[#allocation7 + $0x4a0] ss:$16 sps:$4 sm:$0xff]  }
 0x1c5   :  { %2572 = vmatprep.subr.bf16.mxu1 %v3965_v53  ;;  %2744 = vmatprep.subr.bf16.mxu0 %v3968_v54  ;;  %v4049_v53 = vld [vmem:[#allocation7 + $0x4c4] ss:$16 sps:$4 sm:$0xff]   ;;  %v4052_v54 = vld [vmem:[#allocation7 + $0x4cc] ss:$16 sps:$4 sm:$0xff]  }
 0x1c8   :  { %2573 = vmatpush1.bf16.msra.mxu1 %v3963_v58  ;;  %2745 = vmatpush1.bf16.msra.mxu0 %v3966_v59  ;;  %v4055_v58 = vld [vmem:[#allocation7 + $0x4e4] ss:$16 sps:$4 sm:$0xff]   ;;  %v4058_v59 = vld [vmem:[#allocation7 + $0x4ec] ss:$16 sps:$4 sm:$0xff]  }
 0x1c9   :  { %2574 = vmatprep.subr.bf16.mxu1 %v3971_v60  ;;  %2746 = vmatprep.subr.bf16.mxu0 %v3974_v61  ;;  %v4053_v60 = vld [vmem:[#allocation7 + $0x4e0] ss:$16 sps:$4 sm:$0xff]   ;;  %v4056_v61 = vld [vmem:[#allocation7 + $0x4e8] ss:$16 sps:$4 sm:$0xff]  }
 0x1cc   :  { %2575 = vmatpush1.bf16.msra.mxu1 %v3969_v62  ;;  %2747 = vmatpush1.bf16.msra.mxu0 %v3972_v63  ;;  %v4061_v62 = vld [vmem:[#allocation7 + $0x504] ss:$16 sps:$4 sm:$0xff]   ;;  %v4064_v63 = vld [vmem:[#allocation7 + $0x50c] ss:$16 sps:$4 sm:$0xff]  }
 0x1cd   :  { %2576 = vmatprep.subr.bf16.mxu1 %v3977_v4  ;;  %2748 = vmatprep.subr.bf16.mxu0 %v3980_v6  ;;  %v4059_v4 = vld [vmem:[#allocation7 + $0x500] ss:$16 sps:$4 sm:$0xff]   ;;  %v4062_v6 = vld [vmem:[#allocation7 + $0x508] ss:$16 sps:$4 sm:$0xff]  }
 0x1d0   :  { %2577 = vmatpush1.bf16.msra.mxu1 %v3975_v9  ;;  %2749 = vmatpush1.bf16.msra.mxu0 %v3978_v12  ;;  %v4067_v9 = vld [vmem:[#allocation7 + $0x524] ss:$16 sps:$4 sm:$0xff]   ;;  %v4070_v12 = vld [vmem:[#allocation7 + $0x52c] ss:$16 sps:$4 sm:$0xff]  }
 0x1d1   :  { %2578 = vmatprep.subr.bf16.mxu1 %v3983_v13  ;;  %2750 = vmatprep.subr.bf16.mxu0 %v3986_v14  ;;  %v4065_v13 = vld [vmem:[#allocation7 + $0x520] ss:$16 sps:$4 sm:$0xff]   ;;  %v4068_v14 = vld [vmem:[#allocation7 + $0x528] ss:$16 sps:$4 sm:$0xff]  }
 0x1d4   :  { %2579 = vmatpush1.bf16.msra.mxu1 %v3981_v15  ;;  %2751 = vmatpush1.bf16.msra.mxu0 %v3984_v16  ;;  %v4073_v15 = vld [vmem:[#allocation7 + $0x544] ss:$16 sps:$4 sm:$0xff]   ;;  %v4076_v16 = vld [vmem:[#allocation7 + $0x54c] ss:$16 sps:$4 sm:$0xff]  }
 0x1d5   :  { %2580 = vmatprep.subr.bf16.mxu1 %v3989_v17  ;;  %2752 = vmatprep.subr.bf16.mxu0 %v3992_v18  ;;  %v4071_v17 = vld [vmem:[#allocation7 + $0x540] ss:$16 sps:$4 sm:$0xff]   ;;  %v4074_v18 = vld [vmem:[#allocation7 + $0x548] ss:$16 sps:$4 sm:$0xff]  }
 0x1d8   :  { %2581 = vmatpush1.bf16.msra.mxu1 %v3987_v20  ;;  %2753 = vmatpush1.bf16.msra.mxu0 %v3990_v21  ;;  %v4079_v20 = vld [vmem:[#allocation7 + $0x564] ss:$16 sps:$4 sm:$0xff]   ;;  %v4082_v21 = vld [vmem:[#allocation7 + $0x56c] ss:$16 sps:$4 sm:$0xff]  }
 0x1d9   :  { %2582 = vmatprep.subr.bf16.mxu1 %v3995_v22  ;;  %2754 = vmatprep.subr.bf16.mxu0 %v3998_v23  ;;  %v4077_v22 = vld [vmem:[#allocation7 + $0x560] ss:$16 sps:$4 sm:$0xff]   ;;  %v4080_v23 = vld [vmem:[#allocation7 + $0x568] ss:$16 sps:$4 sm:$0xff]  }
 0x1dc   :  { %2583 = vmatpush1.bf16.msra.mxu1 %v3993_v24  ;;  %2755 = vmatpush1.bf16.msra.mxu0 %v3996_v25  ;;  %v4085_v24 = vld [vmem:[#allocation7 + $0x584] ss:$16 sps:$4 sm:$0xff]   ;;  %v4088_v25 = vld [vmem:[#allocation7 + $0x58c] ss:$16 sps:$4 sm:$0xff]  }
 0x1dd   :  { %2584 = vmatprep.subr.bf16.mxu1 %v4001_v26  ;;  %2756 = vmatprep.subr.bf16.mxu0 %v4004_v27  ;;  %v4083_v26 = vld [vmem:[#allocation7 + $0x580] ss:$16 sps:$4 sm:$0xff]   ;;  %v4086_v27 = vld [vmem:[#allocation7 + $0x588] ss:$16 sps:$4 sm:$0xff]  }
 0x1e0   :  { %2585 = vmatpush1.bf16.msra.mxu1 %v3999_v28  ;;  %2757 = vmatpush1.bf16.msra.mxu0 %v4002_v29  ;;  %v4091_v28 = vld [vmem:[#allocation7 + $0x5a4] ss:$16 sps:$4 sm:$0xff]   ;;  %v4094_v29 = vld [vmem:[#allocation7 + $0x5ac] ss:$16 sps:$4 sm:$0xff]  }
 0x1e1   :  { %2586 = vmatprep.subr.bf16.mxu1 %v4007_v30  ;;  %2758 = vmatprep.subr.bf16.mxu0 %v4010_v31  ;;  %v4089_v30 = vld [vmem:[#allocation7 + $0x5a0] ss:$16 sps:$4 sm:$0xff]   ;;  %v4092_v31 = vld [vmem:[#allocation7 + $0x5a8] ss:$16 sps:$4 sm:$0xff]  }
 0x1e4   :  { %2587 = vmatpush1.bf16.msra.mxu1 %v4005_v32  ;;  %2759 = vmatpush1.bf16.msra.mxu0 %v4008_v33  ;;  %v4097_v32 = vld [vmem:[#allocation7 + $0x5c4] ss:$16 sps:$4 sm:$0xff]   ;;  %v4100_v33 = vld [vmem:[#allocation7 + $0x5cc] ss:$16 sps:$4 sm:$0xff]  }
 0x1e5   :  { %2599 = vmatprep.subr.bf16.mxu1 %v4013_v34  ;;  %2771 = vmatprep.subr.bf16.mxu0 %v4016_v36  ;;  %v4095_v34 = vld [vmem:[#allocation7 + $0x5c0] ss:$16 sps:$4 sm:$0xff]   ;;  %v4098_v36 = vld [vmem:[#allocation7 + $0x5c8] ss:$16 sps:$4 sm:$0xff]  }
 0x1e7   :  { %2589 = vmatmul.mubr.bf16.vlgmr.msra.gmra.mrb[12].mxu1 %v4540_v35  ;;  %2761 = vmatmul.mubr.bf16.vlgmr.msra.gmra.mrb[16].mxu0 %v4540_v35  ;;  %v4034_v35 = vld [vmem:[#allocation7 + $0x46c] ss:$16 sps:$4 sm:$0xff]  }
 0x1e8   :  { %2600 = vmatpush1.bf16.msra.mxu1 %v4011_v37  ;;  %2631 = vmatprep.mubr.bf16.mxu1 %v4552_v56  ;;  %v4103_v37 = vld [vmem:[#allocation7 + $0x5e4] ss:$16 sps:$4 sm:$0xff]  }
 0x1e9   :  { %2772 = vmatpush1.bf16.msra.mxu0 %v4014_v38  ;;  %2803 = vmatprep.mubr.bf16.mxu0 %v4552_v56  ;;  %v4050_v56 = vld [vmem:[#allocation7 + $0x4c8] ss:$16 sps:$4 sm:$0xff]   ;;  %v4106_v38 = vld [vmem:[#allocation7 + $0x5ec] ss:$16 sps:$4 sm:$0xff]  }
 0x1ea   :  { %2601 = vmatprep.subr.bf16.mxu1 %v4019_v3  ;;  %2773 = vmatprep.subr.bf16.mxu0 %v4022_v39  ;;  %v4101_v3 = vld [vmem:[#allocation7 + $0x5e0] ss:$16 sps:$4 sm:$0xff]   ;;  %v4104_v39 = vld [vmem:[#allocation7 + $0x5e8] ss:$16 sps:$4 sm:$0xff]  }
 0x1ec   :  { %2602 = vmatpush1.bf16.msra.mxu1 %v4017_v7  ;;  %v4109_v7 = vld [vmem:[#allocation7 + $0x604] ss:$16 sps:$4 sm:$0xff]  }
 0x1ed   :  { %2774 = vmatpush1.bf16.msra.mxu0 %v4020_v40  ;;  %2603 = vmatprep.subr.bf16.mxu1 %v4025_v41  ;;  %v4112_v40 = vld [vmem:[#allocation7 + $0x60c] ss:$16 sps:$4 sm:$0xff]   ;;  %v4107_v41 = vld [vmem:[#allocation7 + $0x600] ss:$16 sps:$4 sm:$0xff]  }
 0x1ee   :  { %2775 = vmatprep.subr.bf16.mxu0 %v4028_v5  ;;  %v4110_v5 = vld [vmem:[#allocation7 + $0x608] ss:$16 sps:$4 sm:$0xff]  }
 0x1f0   :  { %2604 = vmatpush1.bf16.msra.mxu1 %v4023_v11  ;;  %v4115_v11 = vld [vmem:[#allocation7 + $0x624] ss:$16 sps:$4 sm:$0xff]  }
 0x1f1   :  { %2776 = vmatpush1.bf16.msra.mxu0 %v4026_v42  ;;  %2605 = vmatprep.subr.bf16.mxu1 %v4031_v43  ;;  %v4118_v42 = vld [vmem:[#allocation7 + $0x62c] ss:$16 sps:$4 sm:$0xff]   ;;  %v4113_v43 = vld [vmem:[#allocation7 + $0x620] ss:$16 sps:$4 sm:$0xff]  }
 0x1f2   :  { %2777 = vmatprep.subr.bf16.mxu0 %v4034_v35  ;;  %v4116_v35 = vld [vmem:[#allocation7 + $0x628] ss:$16 sps:$4 sm:$0xff]  }
 0x1f4   :  { %2606 = vmatpush1.bf16.msra.mxu1 %v4029_v10  ;;  %v4121_v10 = vld [vmem:[#allocation7 + $0x644] ss:$16 sps:$4 sm:$0xff]  }
 0x1f5   :  { %2778 = vmatpush1.bf16.msra.mxu0 %v4032_v44  ;;  %2607 = vmatprep.subr.bf16.mxu1 %v4037_v45  ;;  %v4124_v44 = vld [vmem:[#allocation7 + $0x64c] ss:$16 sps:$4 sm:$0xff]   ;;  %v4119_v45 = vld [vmem:[#allocation7 + $0x640] ss:$16 sps:$4 sm:$0xff]  }
 0x1f6   :  { %2779 = vmatprep.subr.bf16.mxu0 %v4040_v46  ;;  %v4122_v46 = vld [vmem:[#allocation7 + $0x648] ss:$16 sps:$4 sm:$0xff]  }
 0x1f8   :  { %2608 = vmatpush1.bf16.msra.mxu1 %v4035_v47  ;;  %v4127_v47 = vld [vmem:[#allocation7 + $0x664] ss:$16 sps:$4 sm:$0xff]  }
 0x1f9   :  { %2780 = vmatpush1.bf16.msra.mxu0 %v4038_v48  ;;  %2609 = vmatprep.subr.bf16.mxu1 %v4043_v49  ;;  %v4125_v48 = vld [vmem:[#allocation7 + $0x660] ss:$16 sps:$4 sm:$0xff]   ;;  %v4128_v49 = vld [vmem:[#allocation7 + $0x668] ss:$16 sps:$4 sm:$0xff]  }
 0x1fa   :  { %2781 = vmatprep.subr.bf16.mxu0 %v4046_v50  ;;  %v4133_v50 = vld [vmem:[#allocation7 + $0x684] ss:$16 sps:$4 sm:$0xff]  }
 0x1fc   :  { %2610 = vmatpush1.bf16.msra.mxu1 %v4041_v51  ;;  %v4136_v51 = vld [vmem:[#allocation7 + $0x68c] ss:$16 sps:$4 sm:$0xff]  }
 0x1fd   :  { %2782 = vmatpush1.bf16.msra.mxu0 %v4044_v52  ;;  %2611 = vmatprep.subr.bf16.mxu1 %v4049_v53  ;;  %v4131_v52 = vld [vmem:[#allocation7 + $0x680] ss:$16 sps:$4 sm:$0xff]   ;;  %v4139_v53 = vld [vmem:[#allocation7 + $0x6a4] ss:$16 sps:$4 sm:$0xff]  }
 0x1fe   :  { %2783 = vmatprep.subr.bf16.mxu0 %v4052_v54  ;;  %v4142_v54 = vld [vmem:[#allocation7 + $0x6ac] ss:$16 sps:$4 sm:$0xff]  }
 0x200   :  { %2612 = vmatpush1.bf16.msra.mxu1 %v4047_v55  ;;  %v4137_v55 = vld [vmem:[#allocation7 + $0x6a0] ss:$16 sps:$4 sm:$0xff]  }
 0x201   :  { %2784 = vmatpush1.bf16.msra.mxu0 %v4050_v56  ;;  %2613 = vmatprep.subr.bf16.mxu1 %v4055_v58  ;;  %v4140_v56 = vld [vmem:[#allocation7 + $0x6a8] ss:$16 sps:$4 sm:$0xff]   ;;  %v4145_v58 = vld [vmem:[#allocation7 + $0x6c4] ss:$16 sps:$4 sm:$0xff]  }
 0x202   :  { %2785 = vmatprep.subr.bf16.mxu0 %v4058_v59  ;;  %v4148_v59 = vld [vmem:[#allocation7 + $0x6cc] ss:$16 sps:$4 sm:$0xff]  }
 0x204   :  { %2614 = vmatpush1.bf16.msra.mxu1 %v4053_v60  ;;  %v4143_v60 = vld [vmem:[#allocation7 + $0x6c0] ss:$16 sps:$4 sm:$0xff]  }
 0x205   :  { %2786 = vmatpush1.bf16.msra.mxu0 %v4056_v61  ;;  %2615 = vmatprep.subr.bf16.mxu1 %v4061_v62  ;;  %v4146_v61 = vld [vmem:[#allocation7 + $0x6c8] ss:$16 sps:$4 sm:$0xff]   ;;  %v4151_v62 = vld [vmem:[#allocation7 + $0x6e4] ss:$16 sps:$4 sm:$0xff]  }
 0x206   :  { %2787 = vmatprep.subr.bf16.mxu0 %v4064_v63  ;;  %v4154_v63 = vld [vmem:[#allocation7 + $0x6ec] ss:$16 sps:$4 sm:$0xff]  }
 0x208   :  { %2616 = vmatpush1.bf16.msra.mxu1 %v4059_v4  ;;  %v4149_v4 = vld [vmem:[#allocation7 + $0x6e0] ss:$16 sps:$4 sm:$0xff]  }
 0x209   :  { %2788 = vmatpush1.bf16.msra.mxu0 %v4062_v6  ;;  %2617 = vmatprep.subr.bf16.mxu1 %v4067_v9  ;;  %v4152_v6 = vld [vmem:[#allocation7 + $0x6e8] ss:$16 sps:$4 sm:$0xff]   ;;  %v4155_v9 = vld [vmem:[#allocation8 + $0x40] sm:$0xff]  }
 0x20a   :  { %2789 = vmatprep.subr.bf16.mxu0 %v4070_v12  ;;  %v4156_v12 = vld [vmem:[#allocation8] sm:$0xff]  }
 0x20c   :  { %2618 = vmatpush1.bf16.msra.mxu1 %v4065_v13  ;;  %v4157_v13 = vld [vmem:[#allocation8 + $0x48] sm:$0xff]  }
 0x20d   :  { %2790 = vmatpush1.bf16.msra.mxu0 %v4068_v14  ;;  %2619 = vmatprep.subr.bf16.mxu1 %v4073_v15  ;;  %v4158_v14 = vld [vmem:[#allocation8 + $0x8] sm:$0xff]   ;;  %v4159_v15 = vld [vmem:[#allocation8 + $0x50] sm:$0xff]  }
 0x20e   :  { %2791 = vmatprep.subr.bf16.mxu0 %v4076_v16  ;;  %v4160_v16 = vld [vmem:[#allocation8 + $0x10] sm:$0xff]  }
 0x210   :  { %2620 = vmatpush1.bf16.msra.mxu1 %v4071_v17  ;;  %v4161_v17 = vld [vmem:[#allocation8 + $0x58] sm:$0xff]  }
 0x211   :  { %2792 = vmatpush1.bf16.msra.mxu0 %v4074_v18  ;;  %2621 = vmatprep.subr.bf16.mxu1 %v4079_v20  ;;  %v4162_v18 = vld [vmem:[#allocation8 + $0x18] sm:$0xff]   ;;  %v4163_v20 = vld [vmem:[#allocation8 + $0x60] sm:$0xff]  }
 0x212   :  { %2793 = vmatprep.subr.bf16.mxu0 %v4082_v21  ;;  %v4164_v21 = vld [vmem:[#allocation8 + $0x20] sm:$0xff]  }
 0x214   :  { %2622 = vmatpush1.bf16.msra.mxu1 %v4077_v22  ;;  %v4165_v22 = vld [vmem:[#allocation8 + $0x68] sm:$0xff]  }
 0x215   :  { %2794 = vmatpush1.bf16.msra.mxu0 %v4080_v23  ;;  %2623 = vmatprep.subr.bf16.mxu1 %v4085_v24  ;;  %v4166_v23 = vld [vmem:[#allocation8 + $0x28] sm:$0xff]   ;;  %v4167_v24 = vld [vmem:[#allocation8 + $0x70] sm:$0xff]  }
 0x216   :  { %2795 = vmatprep.subr.bf16.mxu0 %v4088_v25  ;;  %v4169_v25 = vld [vmem:[#allocation8 + $0x78] sm:$0xff]  }
 0x218   :  { %2624 = vmatpush1.bf16.msra.mxu1 %v4083_v26  ;;  %v4170_v26 = vld [vmem:[#allocation8 + $0x38] sm:$0xff]  }
 0x219   :  { %2796 = vmatpush1.bf16.msra.mxu0 %v4086_v27  ;;  %2625 = vmatprep.subr.bf16.mxu1 %v4091_v28  ;;  %v4171_v27 = vld [vmem:[#allocation10] sm:$0xff]   ;;  %v4371_v28 = vmov 0.0  }
 0x21a   :  { %2797 = vmatprep.subr.bf16.mxu0 %v4094_v29  ;;  %v4172_v29 = vld [vmem:[#allocation10 + $0x8] sm:$0xff]  }
 0x21c   :  { %2626 = vmatpush1.bf16.msra.mxu1 %v4089_v30  ;;  %v4173_v30 = vld [vmem:[#allocation10 + $0x10] sm:$0xff]  }
 0x21d   :  { %2798 = vmatpush1.bf16.msra.mxu0 %v4092_v31  ;;  %2627 = vmatprep.subr.bf16.mxu1 %v4097_v32  ;;  %v2861_v31 = vld [vmem:[%s4595_s4] sm:$0x3] }
 0x21e   :  { %2799 = vmatprep.subr.bf16.mxu0 %v4100_v33  ;;  %v2866_v33 = vrot.slane %v2861_v31, %v1101_v2 }
 0x220   :  { %2628 = vmatpush1.bf16.msra.mxu1 %v4095_v34 }
 0x221   :  { %2800 = vmatpush1.bf16.msra.mxu0 %v4098_v36  ;;  %2629 = vmatprep.subr.bf16.mxu1 %v4103_v37  ;;  %v2870_v37 = vrot.slane %v2861_v31, %v1105_v19 }
 0x222   :  { %2801 = vmatprep.subr.bf16.mxu0 %v4106_v38 }
 0x224   :  { %2630 = vmatpush1.bf16.msra.mxu1 %v4101_v3 }
 0x225   :  { %2802 = vmatpush1.bf16.msra.mxu0 %v4104_v39  ;;  %2642 = vmatprep.subr.bf16.mxu1 %v4109_v7 }
 0x226   :  { %2814 = vmatprep.subr.bf16.mxu0 %v4112_v40 }
 0x227   :  { %2632 = vmatmul.mubr.bf16.vlgmr.msra.gmra.mrb[12].mxu1 %v4542_v8 }
 0x228   :  { %2804 = vmatmul.mubr.bf16.vlgmr.msra.gmra.mrb[16].mxu0 %v4542_v8  ;;  %2643 = vmatpush1.bf16.msra.mxu1 %v4107_v41  ;;  %v4130_v8 = vld [vmem:[#allocation7 + $0x66c] ss:$16 sps:$4 sm:$0xff]  }
 0x229   :  { %2815 = vmatpush1.bf16.msra.mxu0 %v4110_v5  ;;  %2644 = vmatprep.subr.bf16.mxu1 %v4115_v11 }
 0x22a   :  { %2816 = vmatprep.subr.bf16.mxu0 %v4118_v42  ;;  %2674 = vmatprep.mubr.bf16.mxu1 %v4370_v0 }
 0x22b   :  { %2846 = vmatprep.mubr.bf16.mxu0 %v4370_v0  ;;  %v4134_v0 = vld [vmem:[#allocation7 + $0x688] ss:$16 sps:$4 sm:$0xff]  }
 0x22c   :  { %2645 = vmatpush1.bf16.msra.mxu1 %v4113_v43 }
 0x22d   :  { %2817 = vmatpush1.bf16.msra.mxu0 %v4116_v35  ;;  %2646 = vmatprep.subr.bf16.mxu1 %v4121_v10 }
 0x22e   :  { %2818 = vmatprep.subr.bf16.mxu0 %v4124_v44 }
 0x230   :  { %2647 = vmatpush1.bf16.msra.mxu1 %v4119_v45 }
 0x231   :  { %2819 = vmatpush1.bf16.msra.mxu0 %v4122_v46  ;;  %2648 = vmatprep.subr.bf16.mxu1 %v4127_v47 }
 0x232   :  { %2820 = vmatprep.subr.bf16.mxu0 %v4130_v8  ;;  %v4174_v8 = vld [vmem:[#allocation10 + $0x18] sm:$0xff]  }
 0x234   :  { %2649 = vmatpush1.bf16.msra.mxu1 %v4125_v48  ;;  %v4175_v48 = vld [vmem:[#allocation10 + $0x20] sm:$0xff]  }
 0x235   :  { %2821 = vmatpush1.bf16.msra.mxu0 %v4128_v49  ;;  %2650 = vmatprep.subr.bf16.mxu1 %v4133_v50  ;;  %v4176_v49 = vld [vmem:[#allocation10 + $0x28] sm:$0xff]   ;;  %v4177_v50 = vld [vmem:[#allocation10 + $0x30] sm:$0xff]  }
 0x236   :  { %2822 = vmatprep.subr.bf16.mxu0 %v4136_v51  ;;  %v4178_v51 = vld [vmem:[#allocation10 + $0x38] sm:$0xff]  }
 0x238   :  { %2651 = vmatpush1.bf16.msra.mxu1 %v4131_v52 }
 0x239   :  { %2823 = vmatpush1.bf16.msra.mxu0 %v4134_v0  ;;  %2652 = vmatprep.subr.bf16.mxu1 %v4139_v53  ;;  %v3532_v0 = vld [vmem:[%s4597_s6] ss:$0 sm:$0xff]  ;;  %s4329_s6 = scalar_lea.vmem %s3182_s1, 256 }
 0x23a   :  { %2824 = vmatprep.subr.bf16.mxu0 %v4142_v54  ;;  %p4330_p12 = scmp.ne.s32.totalorder %s3182_s1, %s4329_s6  ;;  %p4335_p0 = scmp.lt.s32.totalorder %s4329_s6, %s4329_s6 }
 0x23c   :  { %2653 = vmatpush1.bf16.msra.mxu1 %v4137_v55  ;;  %p4336_p1 = por %p4335_p0, %p4334_p13 }
 0x23d   :  { %2825 = vmatpush1.bf16.msra.mxu0 %v4140_v56  ;;  %2654 = vmatprep.subr.bf16.mxu1 %v4145_v58 }
 0x23e   :  { %2826 = vmatprep.subr.bf16.mxu0 %v4148_v59  ;;  %p4337_p2 = pnand %p4336_p1, %p4330_p12 }
 0x240   :  { %2655 = vmatpush1.bf16.msra.mxu1 %v4143_v60 }
 0x241   :  { %2827 = vmatpush1.bf16.msra.mxu0 %v4146_v61  ;;  %2656 = vmatprep.subr.bf16.mxu1 %v4151_v62 }
 0x242   :  { %2828 = vmatprep.subr.bf16.mxu0 %v4154_v63 }
 0x244   :  { %2657 = vmatpush1.bf16.msra.mxu1 %v4149_v4  ;;  %v3549_v4 = vld [vmem:[%s4599_s8] ss:$0 sm:$0xff] }
 0x245   :  { %2829 = vmatpush1.bf16.msra.mxu0 %v4152_v6  ;;  %3558 = vmatprep.subr.bf16.mxu1 %v4155_v9 }
 0x246   :  { %3589 = vmatprep.subr.bf16.mxu0 %v4371_v28 }
 0x247   :  { %2675 = vmatmul.mubr.bf16.vlgmr.msra.gmra.mrb[12].mxu1 %v4554_v57 }
 0x248   :  { %2847 = vmatmul.mubr.bf16.vlgmr.msra.gmra.mrb[16].mxu0 %v4554_v57  ;;  %3559 = vmatpush3.bf16.msra.mxu1 %v4156_v12  ;;  %v4168_v57 = vld [vmem:[#allocation8 + $0x30] sm:$0xff]  }
 0x249   :  { %3560 = vmatprep.subr.bf16.mxu1 %v4157_v13  ;;  %3590 = vmatpush3.bf16.msra.mxu0 %v4171_v27 }
 0x24a   :  { %3591 = vmatprep.subr.bf16.mxu0 %v4371_v28  ;;  %3605 = vmatprep.mubr.msk.bf16.mxu0 %vm4372_vm0, %v4371_v28 }
 0x24c   :  { %3561 = vmatpush3.bf16.msra.mxu1 %v4158_v14 }
 0x24d   :  { %3562 = vmatprep.subr.bf16.mxu1 %v4159_v15  ;;  %3592 = vmatpush3.bf16.msra.mxu0 %v4172_v29 }
 0x24e   :  { %3593 = vmatprep.subr.bf16.mxu0 %v4371_v28 }
 0x250   :  { %3563 = vmatpush3.bf16.msra.mxu1 %v4160_v16 }
 0x251   :  { %3564 = vmatprep.subr.bf16.mxu1 %v4161_v17  ;;  %3594 = vmatpush3.bf16.msra.mxu0 %v4173_v30 }
 0x252   :  { %3595 = vmatprep.subr.bf16.mxu0 %v4371_v28 }
 0x254   :  { %3565 = vmatpush3.bf16.msra.mxu1 %v4162_v18 }
 0x255   :  { %3566 = vmatprep.subr.bf16.mxu1 %v4163_v20  ;;  %3596 = vmatpush3.bf16.msra.mxu0 %v4174_v8 }
 0x256   :  { %3597 = vmatprep.subr.bf16.mxu0 %v4371_v28 }
 0x258   :  { %3567 = vmatpush3.bf16.msra.mxu1 %v4164_v21 }
 0x259   :  { %3568 = vmatprep.subr.bf16.mxu1 %v4165_v22  ;;  %3598 = vmatpush3.bf16.msra.mxu0 %v4175_v48 }
 0x25a   :  { %3599 = vmatprep.subr.bf16.mxu0 %v4371_v28 }
 0x25c   :  { %3569 = vmatpush3.bf16.msra.mxu1 %v4166_v23 }
 0x25d   :  { %3570 = vmatprep.subr.bf16.mxu1 %v4167_v24  ;;  %3600 = vmatpush3.bf16.msra.mxu0 %v4176_v49 }
 0x25e   :  { %3601 = vmatprep.subr.bf16.mxu0 %v4371_v28 }
 0x260   :  { %3571 = vmatpush3.bf16.msra.mxu1 %v4168_v57 }
 0x261   :  { %3572 = vmatprep.subr.bf16.mxu1 %v4169_v25  ;;  %3602 = vmatpush3.bf16.msra.mxu0 %v4177_v50 }
 0x262   :  { %3603 = vmatprep.subr.bf16.mxu0 %v4371_v28 }
 0x264   :  { %3573 = vmatpush3.bf16.msra.mxu1 %v4170_v26 }
 0x265   :  { %3604 = vmatpush3.bf16.msra.mxu0 %v4178_v51 }
 0x31a   :  { %v2676_v32 = vpop.f32.mrb[12].mxu1 }
 0x31b   :  { %v2848_v34 = vpop.f32.mrb[16].mxu0  ;;  %v2678_v36 = vpop.f32.mrb[13].mxu1 }
 0x31c   :  { %v2857_v38 = vmax.f32 %v2676_v32, %v2848_v34  ;;  %v2850_v3 = vpop.f32.mrb[17].mxu0  ;;  %v2680_v39 = vpop.f32.mrb[14].mxu1 }
 0x31d   :  { %v2858_v7 = vmax.f32 %v2678_v36, %v2850_v3  ;;  %v2852_v40 = vpop.f32.mrb[18].mxu0  ;;  %v2682_v41 = vpop.f32.mrb[15].mxu1 }
 0x31e   :  { %v2873_v5 = vadd.f32 %v2866_v33, %v2857_v38  ;;  %v2859_v11 = vmax.f32 %v2680_v39, %v2852_v40  ;;  %v2854_v42 = vpop.f32.mrb[19].mxu0 }
 0x31f   :  { %v2874_v43 = vadd.f32 %v2870_v37, %v2858_v7  ;;  %v2860_v35 = vmax.f32 %v2682_v41, %v2854_v42 }
 0x320   :  { %4207 = vtanh.f32 %v2873_v5  ;;  %v2875_v10 = vadd.f32 %v2866_v33, %v2859_v11 }
 0x321   :  { %4209 = vtanh.f32 %v2874_v43  ;;  %v2876_v2 = vadd.f32 %v2870_v37, %v2860_v35 }
 0x322   :  { %4211 = vtanh.f32 %v2875_v10 }
 0x323   :  { %4213 = vtanh.f32 %v2876_v2 }
 0x32a   :  { %v4208_v44 = vpop.eup %4207 }
 0x32b   :  { %v4210_v1 = vpop.eup %4209 }
 0x32c   :  { %v4212_v19 = vpop.eup %4211 }
 0x32d   :  { %v4214_v45 = vpop.eup %4213  ;;  %v2881_v46 = vpack.c.bf16 %v4212_v19, %v4208_v44 }
 0x32e   :  { %v2882_v47 = vpack.c.bf16 %v4214_v45, %v4210_v1 }
 0x330   :  { %3050 = vmatprep.mubr.bf16.mxu1 %v2882_v47 }
 0x331   :  { %3051 = vmatmul.mubr.bf16.vlgmr.msra.gmra.mrb[16].mxu1 %v2881_v46 }
 0x404   :  { %v3574_v52 = vpop.f32.mrb[16].mxu1 }
 0x405   :  { %v3575_v53 = vpop.f32.mrb[17].mxu1 }
 0x406   :  { %v3576_v54 = vadd.f32 %v3575_v53, %v3574_v52  ;;  %v3577_v55 = vpop.f32.mrb[18].mxu1 }
 0x407   :  { %v3578_v56 = vpop.f32.mrb[19].mxu1 }
 0x408   :  { %v3053_v58 = vadd.f32 %v3576_v54, %v3532_v0  ;;  %v3579_v59 = vadd.f32 %v3578_v56, %v3577_v55 }
 0x40a   :  { %v3056_v60 = vadd.f32 %v3579_v59, %v3532_v0  ;;  %4215 = vtanh.f32 %v3053_v58 }
 0x40c   :  { %4217 = vtanh.f32 %v3056_v60 }
 0x414   :  { %v4216_v61 = vpop.eup %4215 }
 0x416   :  { %v4218_v62 = vpop.eup %4217 }
 0x417   :  { %v3061_v63 = vpack.c.bf16 %v4218_v62, %v4216_v61 }
 0x419   :  { %3606 = vmatmul.mubr.bf16.vlgmr.msra.gmra.mrb[20].mxu0 %v3061_v63 }
 0x4ec   :  { %v3167_v6 = vpop.f32.mrb[20].mxu0 }
 0x4ed   :  { %v3168_v9 = vadd.f32 %v3549_v4, %v3167_v6  ;;  %v3607_v12 = vpop.f32.mrb[21].mxu0 }
 0x4ee   :  { %v3170_v13 = vpop.f32.mrb[22].mxu0 }
 0x4ef   :  { %3174 = vst [vmem:[#allocation11] sm:$0xff] %v3168_v9  ;;  %v3171_v14 = vadd.f32 %v3549_v4, %v3170_v13  ;;  %v3608_v15 = vpop.f32.mrb[23].mxu0 }
 0x4f1   :  { %3175 = vst [vmem:[#allocation11 + $0x8] sm:$0xff] %v3171_v14 }
 0x4f2   :  { %4340 = shalt.err (!%p4337_p2)
}
 0x4f3   :  { %s4341_s16 = scalar_lea.hbm %s4600_s9, 256 }
 0x4f4   :  { %p4342_p3 = scmp.ne.s32.totalorder %s4600_s9, %s4341_s16  ;;  %p4345_p4 = scmp.lt.u32.totalorder %s4341_s16, %s4600_s9 }
 0x4f6   :  { %p4347_p5 = pnand %p4345_p4, %p4342_p3 }
 0x4f8   :  { %4350 = shalt.err (!%p4347_p5)
}
 0x4f9   :  { %s4374_s19 = smov 128   ;;  %s4375_s20 = smov 8  }
 0x4fa   :  { %3187 = dma.vmem_to_hbm [thread:$0]  %s3182_s1, 256, %s4600_s9, [#allocation4], %s4374_s19, %s4374_s19, %s4375_s20  }
 0x4fb   :  { %4357 = dma.done.wait [#allocation4], 256  }
 0x4fc   :  { %4358 = vsyncadd [#allocation4], 4294967040 }
 0x4fd   :  { %3191 = vsyncpa [#allocation3], 1 }
 0x4fe   :  { %3192 = vsyncpa [#allocation6], 1 }
 0x4ff   :  { %3193 = vsyncpa [#allocation9], 1 }
 0x500   :  { %3194 = vsyncpa [#allocation4], 1 }

</bundles_post_ra>
